<compile_context>
chip_gen: v7x
topology: tpu7x:2x2x1
jax: 0.10.0
libtpu: 0.0.40
codegen_flags: <defaults>
</compile_context>

<pallas_src>
import jax
import jax.numpy as jnp
from jax.experimental import pallas as pl
from jax.experimental.pallas import tpu as pltpu


# ---------------------------------------------------------------------------
# In-kernel helpers
# ---------------------------------------------------------------------------
def _one_hot_rows(n_out, n_in, src_of_row):
    """(n_out, n_in) f32 matrix M with M[r, src_of_row(r)] = 1.

    Sources that fall outside [0, n_in) simply match no column, giving an
    all-zero row -- which is exactly the conv's zero padding when the matrix is
    used as a row-gather on the left of a matmul.
    """
    r = jax.lax.broadcasted_iota(jnp.int32, (n_out, n_in), 0)
    c = jax.lax.broadcasted_iota(jnp.int32, (n_out, n_in), 1)
    return (c == src_of_row(r)).astype(jnp.float32)


def _conv_stage(h, w_flat_ref, stride):
    """Conv1d(k=3, pad=1, stride) + ReLU on channels-last h: (l_in, c_in) f32.

    Padding / tap shift / stride are folded into one-hot gather matmuls, the
    three gathered taps are lane-concatenated into an (l_out, 3*c_in) im2col
    slab, and the conv is a single bf16 MXU matmul with f32 accumulation.
    """
    l_in, c_in = h.shape
    l_out = (l_in - 1) // stride + 1          # == (l_in + 2*1 - 3) // stride + 1
    taps = []
    for k in range(3):
        if stride == 1 and k == 1:
            taps.append(h)                    # centre tap needs no shift
            continue
        g = _one_hot_rows(l_out, l_in, lambda r, _k=k: stride * r + (_k - 1))
        taps.append(jnp.dot(g, h, preferred_element_type=jnp.float32))
    slab = jnp.concatenate(taps, axis=-1)     # (l_out, 3*c_in)
    acc = jnp.dot(slab.astype(jnp.bfloat16), w_flat_ref[...],
                  preferred_element_type=jnp.float32)
    return jnp.maximum(acc, 0.0)


# ---------------------------------------------------------------------------
# Fused kernel: stem + layer1..layer4 + classifier head, one batch item / step
# ---------------------------------------------------------------------------
def _fused_kernel(slab0_ref, w_stem_ref, w1_ref, w2_ref, w3_ref, w4_ref,
                  gamma_ref, beta_ref, wfc_ref, bfc_ref, out_ref):
    f32 = jnp.float32

    # --- Stem conv: Conv1d(1 -> 16, k=7, s=2, p=3, bias=False) ---
    # slab0 is the (l_conv, 7) im2col of the 1-channel input (built in wrapper).
    conv = jnp.dot(slab0_ref[0], w_stem_ref[...], preferred_element_type=f32)

    # --- Stem MaxPool1d(k=3, s=2, p=1) ---
    # out[o] = max(conv[2o-1], conv[2o], conv[2o+1]) with -inf edge padding.
    # Clamping out-of-range taps to the in-range neighbour leaves the max
    # unchanged, so no -inf rows are needed; selections are exact f32 matmuls.
    l_conv = conv.shape[0]
    l_pool = (l_conv + 1) // 2

    def sel(src_of_row):
        return jnp.dot(_one_hot_rows(l_pool, l_conv, src_of_row), conv,
                       preferred_element_type=f32)

    h = jnp.maximum(sel(lambda r: jnp.maximum(2 * r - 1, 0)),
                    jnp.maximum(sel(lambda r: 2 * r),
                                sel(lambda r: jnp.minimum(2 * r + 1, l_conv - 1))))

    # --- layer1..layer4: Conv1d(k=3, p=1) + ReLU, channels 16->32->64->128->256
    h = _conv_stage(h, w1_ref, stride=1)
    h = _conv_stage(h, w2_ref, stride=2)
    h = _conv_stage(h, w3_ref, stride=2)
    h = _conv_stage(h, w4_ref, stride=2)

    # --- Head (LNGAPBlock stand-in): GAP -> LayerNorm -> Linear ---
    pooled = jnp.mean(h, axis=0, keepdims=True)              # (1, 256)
    mu = jnp.mean(pooled, axis=-1, keepdims=True)
    var = jnp.mean((pooled - mu) ** 2, axis=-1, keepdims=True)
    normed = (pooled - mu) * jax.lax.rsqrt(var + 1e-5)
    normed = normed * gamma_ref[...] + beta_ref[...]
    logits = jnp.dot(normed.astype(jnp.bfloat16), wfc_ref[...],
                     preferred_element_type=f32) + bfc_ref[...]
    out_ref[0] = logits.astype(out_ref.dtype)


# ---------------------------------------------------------------------------
# Wrapper
# ---------------------------------------------------------------------------
def convmsanet_forward(x_ncl, packed):
    """x_ncl: (B, 1, L) float, NCL like the PyTorch module.  Returns (B, num_classes)."""
    B, c_in, L = x_ncl.shape
    assert c_in == 1
    num_classes = packed["w_fc"].shape[-1]

    # Stem im2col (k=7, stride=2, pad=3) on the tiny 1-channel input: one cheap
    # XLA gather that folds padding + stride, so the kernel never performs
    # strided or lane-sparse (C_in = 1) reads.
    x = x_ncl.reshape(B, L).astype(jnp.float32)
    xp = jnp.pad(x, ((0, 0), (3, 3)))
    l_conv = (L + 2 * 3 - 7) // 2 + 1
    win = 2 * jnp.arange(l_conv)[:, None] + jnp.arange(7)[None, :]
    slab0 = jnp.take(xp, win, axis=1).astype(jnp.bfloat16)    # (B, l_conv, 7)

    operands = (slab0, packed["w_stem"], packed["w1"], packed["w2"],
                packed["w3"], packed["w4"], packed["ln_gamma"],
                packed["ln_beta"], packed["w_fc"], packed["b_fc"])

    def _resident(a):                 # weight stays at block (0, 0) every step
        def imap(b):
            return (0,) * a.ndim
        return pl.BlockSpec(a.shape, imap)

    in_specs = [pl.BlockSpec((1, l_conv, 7), lambda b: (b, 0, 0))]
    in_specs += [_resident(a) for a in operands[1:]]

    out = pl.pallas_call(
        _fused_kernel,
        out_shape=jax.ShapeDtypeStruct((B, 1, num_classes), jnp.float32),
        grid=(B,),
        in_specs=in_specs,
        out_specs=pl.BlockSpec((1, 1, num_classes), lambda b: (b, 0, 0)),
        compiler_params=pltpu.CompilerParams(
            dimension_semantics=("parallel",),
            vmem_limit_bytes=32 * 1024 * 1024,
        ),
    )(*operands)
    return out.reshape(B, num_classes)


# ---------------------------------------------------------------------------
# Parameters
# ---------------------------------------------------------------------------
def init_params(key, num_classes=10):
    ks = jax.random.split(key, 6)

    def conv_w(k, K, c_in, c_out):
        scale = 1.0 / jnp.sqrt(jnp.float32(K * c_in))
        return jax.random.normal(k, (K, c_in, c_out), jnp.float32) * scale

    return {
        "w_stem": conv_w(ks[0], 7, 1, 16),
        "w1": conv_w(ks[1], 3, 16, 32),
        "w2": conv_w(ks[2], 3, 32, 64),
        "w3": conv_w(ks[3], 3, 64, 128),
        "w4": conv_w(ks[4], 3, 128, 256),
        "ln_gamma": jnp.ones((1, 256), jnp.float32),
        "ln_beta": jnp.zeros((1, 256), jnp.float32),
        "w_fc": jax.random.normal(ks[5], (256, num_classes), jnp.float32)
                * (1.0 / jnp.sqrt(256.0)),
        "b_fc": jnp.zeros((1, num_classes), jnp.float32),
    }


def pack_params(params):
    """Flatten conv weights (K, C_in, C_out) -> (K*C_in, C_out) matching the
    im2col slab layout, and cast matmul operands to bf16 (f32 accumulation
    happens in-kernel; LayerNorm scale/shift and biases stay f32)."""
    def flat(w):
        K, ci, co = w.shape
        return w.reshape(K * ci, co).astype(jnp.bfloat16)

    return {
        "w_stem": flat(params["w_stem"]),      # (7, 16)
        "w1": flat(params["w1"]),              # (48, 32)
        "w2": flat(params["w2"]),              # (96, 64)
        "w3": flat(params["w3"]),              # (192, 128)
        "w4": flat(params["w4"]),              # (384, 256)
        "ln_gamma": params["ln_gamma"].astype(jnp.float32),
        "ln_beta": params["ln_beta"].astype(jnp.float32),
        "w_fc": params["w_fc"].astype(jnp.bfloat16),
        "b_fc": params["b_fc"].astype(jnp.float32),
    }


if __name__ == "__main__":
    key = jax.random.PRNGKey(0)
    pkey, xkey = jax.random.split(key)
    params = init_params(pkey, num_classes=10)
    packed = pack_params(params)

    # NCL input consistent with the module: batch=2, 1 input channel, length=128.
    x = jax.random.normal(xkey, (2, 1, 128), jnp.float32)

    forward = jax.jit(convmsanet_forward)
    logits = forward(x, packed)
    jax.block_until_ready(logits)
    assert logits.shape == (2, 10) and logits.dtype == jnp.float32
    print("KERNEL_OK")
</pallas_src>

<mosaic_0001>
module attributes {stable_mosaic.version = 11 : i64} {
  func.func @_fused_kernel(%arg0: i32, %arg1: memref<1x64x7xbf16, #tpu.memory_space<vmem>>, %arg2: memref<7x16xbf16, #tpu.memory_space<vmem>>, %arg3: memref<48x32xbf16, #tpu.memory_space<vmem>>, %arg4: memref<96x64xbf16, #tpu.memory_space<vmem>>, %arg5: memref<192x128xbf16, #tpu.memory_space<vmem>>, %arg6: memref<384x256xbf16, #tpu.memory_space<vmem>>, %arg7: memref<1x256xf32, #tpu.memory_space<vmem>>, %arg8: memref<1x256xf32, #tpu.memory_space<vmem>>, %arg9: memref<256x10xbf16, #tpu.memory_space<vmem>>, %arg10: memref<1x10xf32, #tpu.memory_space<vmem>>, %arg11: memref<1x1x10xf32, #tpu.memory_space<vmem>>) attributes {dimension_semantics = [#tpu.dimension_semantics<parallel>], iteration_bounds = array<i64: 2>, scalar_prefetch = 0 : i64, scratch_operands = 0 : i64, tpu.core_type = #tpu.core_type<tc>, window_params = [{transform_indices = @transform_0, window_bounds = array<i64: 1, 64, 7>}, {pipeline_mode = #tpu.pipeline_mode<synchronous>, transform_indices = @transform_1, window_bounds = array<i64: 7, 16>}, {pipeline_mode = #tpu.pipeline_mode<synchronous>, transform_indices = @transform_2, window_bounds = array<i64: 48, 32>}, {pipeline_mode = #tpu.pipeline_mode<synchronous>, transform_indices = @transform_3, window_bounds = array<i64: 96, 64>}, {pipeline_mode = #tpu.pipeline_mode<synchronous>, transform_indices = @transform_4, window_bounds = array<i64: 192, 128>}, {pipeline_mode = #tpu.pipeline_mode<synchronous>, transform_indices = @transform_5, window_bounds = array<i64: 384, 256>}, {pipeline_mode = #tpu.pipeline_mode<synchronous>, transform_indices = @transform_6, window_bounds = array<i64: 1, 256>}, {pipeline_mode = #tpu.pipeline_mode<synchronous>, transform_indices = @transform_7, window_bounds = array<i64: 1, 256>}, {pipeline_mode = #tpu.pipeline_mode<synchronous>, transform_indices = @transform_8, window_bounds = array<i64: 256, 10>}, {pipeline_mode = #tpu.pipeline_mode<synchronous>, transform_indices = @transform_9, window_bounds = array<i64: 1, 10>}, {transform_indices = @transform_10, window_bounds = array<i64: 1, 1, 10>}]} {
    %c0 = arith.constant 0 : index
    %c0_0 = arith.constant 0 : index
    %c0_1 = arith.constant 0 : index
    %0 = vector.load %arg1[%c0, %c0_0, %c0_1] : memref<1x64x7xbf16, #tpu.memory_space<vmem>>, vector<1x64x7xbf16>
    %1 = vector.shape_cast %0 : vector<1x64x7xbf16> to vector<64x7xbf16>
    %c0_2 = arith.constant 0 : index
    %c0_3 = arith.constant 0 : index
    %2 = vector.load %arg2[%c0_2, %c0_3] : memref<7x16xbf16, #tpu.memory_space<vmem>>, vector<7x16xbf16>
    %cst = arith.constant dense<0.000000e+00> : vector<64x16xf32>
    %3 = tpu.matmul %1, %2, %cst {dimension_numbers = #tpu.dot_dimension_numbers<[1], [0], [0], [1], [0, 0, 1, 1], [], []>} : vector<64x7xbf16>, vector<7x16xbf16>, vector<64x16xf32> -> vector<64x16xf32>
    %4 = tpu.iota {dimensions = array<i32: 0>} : vector<32x64xi32>
    %5 = tpu.iota {dimensions = array<i32: 1>} : vector<32x64xi32>
    %c2_i32 = arith.constant 2 : i32
    %6 = vector.broadcast %c2_i32 : i32 to vector<32x64xi32>
    %7 = arith.muli %6, %4 : vector<32x64xi32>
    %c1_i32 = arith.constant 1 : i32
    %8 = vector.broadcast %c1_i32 : i32 to vector<32x64xi32>
    %9 = arith.subi %7, %8 : vector<32x64xi32>
    %c0_i32 = arith.constant 0 : i32
    %10 = vector.broadcast %c0_i32 : i32 to vector<32x64xi32>
    %11 = arith.maxsi %9, %10 : vector<32x64xi32>
    %12 = arith.cmpi eq, %5, %11 : vector<32x64xi32>
    %13 = arith.extui %12 : vector<32x64xi1> to vector<32x64xi32>
    %14 = arith.sitofp %13 : vector<32x64xi32> to vector<32x64xf32>
    %cst_4 = arith.constant dense<0.000000e+00> : vector<32x16xf32>
    %15 = tpu.matmul %14, %3, %cst_4 {dimension_numbers = #tpu.dot_dimension_numbers<[1], [0], [0], [1], [0, 0, 1, 1], [], []>} : vector<32x64xf32>, vector<64x16xf32>, vector<32x16xf32> -> vector<32x16xf32>
    %16 = tpu.iota {dimensions = array<i32: 0>} : vector<32x64xi32>
    %17 = tpu.iota {dimensions = array<i32: 1>} : vector<32x64xi32>
    %c2_i32_5 = arith.constant 2 : i32
    %18 = vector.broadcast %c2_i32_5 : i32 to vector<32x64xi32>
    %19 = arith.muli %18, %16 : vector<32x64xi32>
    %20 = arith.cmpi eq, %17, %19 : vector<32x64xi32>
    %21 = arith.extui %20 : vector<32x64xi1> to vector<32x64xi32>
    %22 = arith.sitofp %21 : vector<32x64xi32> to vector<32x64xf32>
    %cst_6 = arith.constant dense<0.000000e+00> : vector<32x16xf32>
    %23 = tpu.matmul %22, %3, %cst_6 {dimension_numbers = #tpu.dot_dimension_numbers<[1], [0], [0], [1], [0, 0, 1, 1], [], []>} : vector<32x64xf32>, vector<64x16xf32>, vector<32x16xf32> -> vector<32x16xf32>
    %24 = tpu.iota {dimensions = array<i32: 0>} : vector<32x64xi32>
    %25 = tpu.iota {dimensions = array<i32: 1>} : vector<32x64xi32>
    %c2_i32_7 = arith.constant 2 : i32
    %26 = vector.broadcast %c2_i32_7 : i32 to vector<32x64xi32>
    %27 = arith.muli %26, %24 : vector<32x64xi32>
    %c1_i32_8 = arith.constant 1 : i32
    %28 = vector.broadcast %c1_i32_8 : i32 to vector<32x64xi32>
    %29 = arith.addi %27, %28 : vector<32x64xi32>
    %c63_i32 = arith.constant 63 : i32
    %30 = vector.broadcast %c63_i32 : i32 to vector<32x64xi32>
    %31 = arith.minsi %29, %30 : vector<32x64xi32>
    %32 = arith.cmpi eq, %25, %31 : vector<32x64xi32>
    %33 = arith.extui %32 : vector<32x64xi1> to vector<32x64xi32>
    %34 = arith.sitofp %33 : vector<32x64xi32> to vector<32x64xf32>
    %cst_9 = arith.constant dense<0.000000e+00> : vector<32x16xf32>
    %35 = tpu.matmul %34, %3, %cst_9 {dimension_numbers = #tpu.dot_dimension_numbers<[1], [0], [0], [1], [0, 0, 1, 1], [], []>} : vector<32x64xf32>, vector<64x16xf32>, vector<32x16xf32> -> vector<32x16xf32>
    %36 = arith.maximumf %23, %35 : vector<32x16xf32>
    %37 = arith.maximumf %15, %36 : vector<32x16xf32>
    %38 = tpu.iota {dimensions = array<i32: 0>} : vector<32x32xi32>
    %39 = tpu.iota {dimensions = array<i32: 1>} : vector<32x32xi32>
    %c1_i32_10 = arith.constant 1 : i32
    %40 = vector.broadcast %c1_i32_10 : i32 to vector<32x32xi32>
    %41 = arith.muli %40, %38 : vector<32x32xi32>
    %c-1_i32 = arith.constant -1 : i32
    %42 = vector.broadcast %c-1_i32 : i32 to vector<32x32xi32>
    %43 = arith.addi %41, %42 : vector<32x32xi32>
    %44 = arith.cmpi eq, %39, %43 : vector<32x32xi32>
    %45 = arith.extui %44 : vector<32x32xi1> to vector<32x32xi32>
    %46 = arith.sitofp %45 : vector<32x32xi32> to vector<32x32xf32>
    %cst_11 = arith.constant dense<0.000000e+00> : vector<32x16xf32>
    %47 = tpu.matmul %46, %37, %cst_11 {dimension_numbers = #tpu.dot_dimension_numbers<[1], [0], [0], [1], [0, 0, 1, 1], [], []>} : vector<32x32xf32>, vector<32x16xf32>, vector<32x16xf32> -> vector<32x16xf32>
    %48 = tpu.iota {dimensions = array<i32: 0>} : vector<32x32xi32>
    %49 = tpu.iota {dimensions = array<i32: 1>} : vector<32x32xi32>
    %c1_i32_12 = arith.constant 1 : i32
    %50 = vector.broadcast %c1_i32_12 : i32 to vector<32x32xi32>
    %51 = arith.muli %50, %48 : vector<32x32xi32>
    %c1_i32_13 = arith.constant 1 : i32
    %52 = vector.broadcast %c1_i32_13 : i32 to vector<32x32xi32>
    %53 = arith.addi %51, %52 : vector<32x32xi32>
    %54 = arith.cmpi eq, %49, %53 : vector<32x32xi32>
    %55 = arith.extui %54 : vector<32x32xi1> to vector<32x32xi32>
    %56 = arith.sitofp %55 : vector<32x32xi32> to vector<32x32xf32>
    %cst_14 = arith.constant dense<0.000000e+00> : vector<32x16xf32>
    %57 = tpu.matmul %56, %37, %cst_14 {dimension_numbers = #tpu.dot_dimension_numbers<[1], [0], [0], [1], [0, 0, 1, 1], [], []>} : vector<32x32xf32>, vector<32x16xf32>, vector<32x16xf32> -> vector<32x16xf32>
    %58 = tpu.concatenate %47, %37, %57 in 1 : vector<32x16xf32>, vector<32x16xf32>, vector<32x16xf32> -> vector<32x48xf32>
    %59 = arith.truncf %58 : vector<32x48xf32> to vector<32x48xbf16>
    %c0_15 = arith.constant 0 : index
    %c0_16 = arith.constant 0 : index
    %60 = vector.load %arg3[%c0_15, %c0_16] : memref<48x32xbf16, #tpu.memory_space<vmem>>, vector<48x32xbf16>
    %cst_17 = arith.constant dense<0.000000e+00> : vector<32x32xf32>
    %61 = tpu.matmul %59, %60, %cst_17 {dimension_numbers = #tpu.dot_dimension_numbers<[1], [0], [0], [1], [0, 0, 1, 1], [], []>} : vector<32x48xbf16>, vector<48x32xbf16>, vector<32x32xf32> -> vector<32x32xf32>
    %cst_18 = arith.constant 0.000000e+00 : f32
    %62 = vector.broadcast %cst_18 : f32 to vector<32x32xf32>
    %63 = arith.maximumf %61, %62 : vector<32x32xf32>
    %64 = tpu.iota {dimensions = array<i32: 0>} : vector<16x32xi32>
    %65 = tpu.iota {dimensions = array<i32: 1>} : vector<16x32xi32>
    %c2_i32_19 = arith.constant 2 : i32
    %66 = vector.broadcast %c2_i32_19 : i32 to vector<16x32xi32>
    %67 = arith.muli %66, %64 : vector<16x32xi32>
    %c-1_i32_20 = arith.constant -1 : i32
    %68 = vector.broadcast %c-1_i32_20 : i32 to vector<16x32xi32>
    %69 = arith.addi %67, %68 : vector<16x32xi32>
    %70 = arith.cmpi eq, %65, %69 : vector<16x32xi32>
    %71 = arith.extui %70 : vector<16x32xi1> to vector<16x32xi32>
    %72 = arith.sitofp %71 : vector<16x32xi32> to vector<16x32xf32>
    %cst_21 = arith.constant dense<0.000000e+00> : vector<16x32xf32>
    %73 = tpu.matmul %72, %63, %cst_21 {dimension_numbers = #tpu.dot_dimension_numbers<[1], [0], [0], [1], [0, 0, 1, 1], [], []>} : vector<16x32xf32>, vector<32x32xf32>, vector<16x32xf32> -> vector<16x32xf32>
    %74 = tpu.iota {dimensions = array<i32: 0>} : vector<16x32xi32>
    %75 = tpu.iota {dimensions = array<i32: 1>} : vector<16x32xi32>
    %c2_i32_22 = arith.constant 2 : i32
    %76 = vector.broadcast %c2_i32_22 : i32 to vector<16x32xi32>
    %77 = arith.muli %76, %74 : vector<16x32xi32>
    %c0_i32_23 = arith.constant 0 : i32
    %78 = vector.broadcast %c0_i32_23 : i32 to vector<16x32xi32>
    %79 = arith.addi %77, %78 : vector<16x32xi32>
    %80 = arith.cmpi eq, %75, %79 : vector<16x32xi32>
    %81 = arith.extui %80 : vector<16x32xi1> to vector<16x32xi32>
    %82 = arith.sitofp %81 : vector<16x32xi32> to vector<16x32xf32>
    %cst_24 = arith.constant dense<0.000000e+00> : vector<16x32xf32>
    %83 = tpu.matmul %82, %63, %cst_24 {dimension_numbers = #tpu.dot_dimension_numbers<[1], [0], [0], [1], [0, 0, 1, 1], [], []>} : vector<16x32xf32>, vector<32x32xf32>, vector<16x32xf32> -> vector<16x32xf32>
    %84 = tpu.iota {dimensions = array<i32: 0>} : vector<16x32xi32>
    %85 = tpu.iota {dimensions = array<i32: 1>} : vector<16x32xi32>
    %c2_i32_25 = arith.constant 2 : i32
    %86 = vector.broadcast %c2_i32_25 : i32 to vector<16x32xi32>
    %87 = arith.muli %86, %84 : vector<16x32xi32>
    %c1_i32_26 = arith.constant 1 : i32
    %88 = vector.broadcast %c1_i32_26 : i32 to vector<16x32xi32>
    %89 = arith.addi %87, %88 : vector<16x32xi32>
    %90 = arith.cmpi eq, %85, %89 : vector<16x32xi32>
    %91 = arith.extui %90 : vector<16x32xi1> to vector<16x32xi32>
    %92 = arith.sitofp %91 : vector<16x32xi32> to vector<16x32xf32>
    %cst_27 = arith.constant dense<0.000000e+00> : vector<16x32xf32>
    %93 = tpu.matmul %92, %63, %cst_27 {dimension_numbers = #tpu.dot_dimension_numbers<[1], [0], [0], [1], [0, 0, 1, 1], [], []>} : vector<16x32xf32>, vector<32x32xf32>, vector<16x32xf32> -> vector<16x32xf32>
    %94 = tpu.concatenate %73, %83, %93 in 1 : vector<16x32xf32>, vector<16x32xf32>, vector<16x32xf32> -> vector<16x96xf32>
    %95 = arith.truncf %94 : vector<16x96xf32> to vector<16x96xbf16>
    %c0_28 = arith.constant 0 : index
    %c0_29 = arith.constant 0 : index
    %96 = vector.load %arg4[%c0_28, %c0_29] : memref<96x64xbf16, #tpu.memory_space<vmem>>, vector<96x64xbf16>
    %cst_30 = arith.constant dense<0.000000e+00> : vector<16x64xf32>
    %97 = tpu.matmul %95, %96, %cst_30 {dimension_numbers = #tpu.dot_dimension_numbers<[1], [0], [0], [1], [0, 0, 1, 1], [], []>} : vector<16x96xbf16>, vector<96x64xbf16>, vector<16x64xf32> -> vector<16x64xf32>
    %cst_31 = arith.constant 0.000000e+00 : f32
    %98 = vector.broadcast %cst_31 : f32 to vector<16x64xf32>
    %99 = arith.maximumf %97, %98 : vector<16x64xf32>
    %100 = tpu.iota {dimensions = array<i32: 0>} : vector<8x16xi32>
    %101 = tpu.iota {dimensions = array<i32: 1>} : vector<8x16xi32>
    %c2_i32_32 = arith.constant 2 : i32
    %102 = vector.broadcast %c2_i32_32 : i32 to vector<8x16xi32>
    %103 = arith.muli %102, %100 : vector<8x16xi32>
    %c-1_i32_33 = arith.constant -1 : i32
    %104 = vector.broadcast %c-1_i32_33 : i32 to vector<8x16xi32>
    %105 = arith.addi %103, %104 : vector<8x16xi32>
    %106 = arith.cmpi eq, %101, %105 : vector<8x16xi32>
    %107 = arith.extui %106 : vector<8x16xi1> to vector<8x16xi32>
    %108 = arith.sitofp %107 : vector<8x16xi32> to vector<8x16xf32>
    %cst_34 = arith.constant dense<0.000000e+00> : vector<8x64xf32>
    %109 = tpu.matmul %108, %99, %cst_34 {dimension_numbers = #tpu.dot_dimension_numbers<[1], [0], [0], [1], [0, 0, 1, 1], [], []>} : vector<8x16xf32>, vector<16x64xf32>, vector<8x64xf32> -> vector<8x64xf32>
    %110 = tpu.iota {dimensions = array<i32: 0>} : vector<8x16xi32>
    %111 = tpu.iota {dimensions = array<i32: 1>} : vector<8x16xi32>
    %c2_i32_35 = arith.constant 2 : i32
    %112 = vector.broadcast %c2_i32_35 : i32 to vector<8x16xi32>
    %113 = arith.muli %112, %110 : vector<8x16xi32>
    %c0_i32_36 = arith.constant 0 : i32
    %114 = vector.broadcast %c0_i32_36 : i32 to vector<8x16xi32>
    %115 = arith.addi %113, %114 : vector<8x16xi32>
    %116 = arith.cmpi eq, %111, %115 : vector<8x16xi32>
    %117 = arith.extui %116 : vector<8x16xi1> to vector<8x16xi32>
    %118 = arith.sitofp %117 : vector<8x16xi32> to vector<8x16xf32>
    %cst_37 = arith.constant dense<0.000000e+00> : vector<8x64xf32>
    %119 = tpu.matmul %118, %99, %cst_37 {dimension_numbers = #tpu.dot_dimension_numbers<[1], [0], [0], [1], [0, 0, 1, 1], [], []>} : vector<8x16xf32>, vector<16x64xf32>, vector<8x64xf32> -> vector<8x64xf32>
    %120 = tpu.iota {dimensions = array<i32: 0>} : vector<8x16xi32>
    %121 = tpu.iota {dimensions = array<i32: 1>} : vector<8x16xi32>
    %c2_i32_38 = arith.constant 2 : i32
    %122 = vector.broadcast %c2_i32_38 : i32 to vector<8x16xi32>
    %123 = arith.muli %122, %120 : vector<8x16xi32>
    %c1_i32_39 = arith.constant 1 : i32
    %124 = vector.broadcast %c1_i32_39 : i32 to vector<8x16xi32>
    %125 = arith.addi %123, %124 : vector<8x16xi32>
    %126 = arith.cmpi eq, %121, %125 : vector<8x16xi32>
    %127 = arith.extui %126 : vector<8x16xi1> to vector<8x16xi32>
    %128 = arith.sitofp %127 : vector<8x16xi32> to vector<8x16xf32>
    %cst_40 = arith.constant dense<0.000000e+00> : vector<8x64xf32>
    %129 = tpu.matmul %128, %99, %cst_40 {dimension_numbers = #tpu.dot_dimension_numbers<[1], [0], [0], [1], [0, 0, 1, 1], [], []>} : vector<8x16xf32>, vector<16x64xf32>, vector<8x64xf32> -> vector<8x64xf32>
    %130 = tpu.concatenate %109, %119, %129 in 1 : vector<8x64xf32>, vector<8x64xf32>, vector<8x64xf32> -> vector<8x192xf32>
    %131 = arith.truncf %130 : vector<8x192xf32> to vector<8x192xbf16>
    %c0_41 = arith.constant 0 : index
    %c0_42 = arith.constant 0 : index
    %132 = vector.load %arg5[%c0_41, %c0_42] : memref<192x128xbf16, #tpu.memory_space<vmem>>, vector<192x128xbf16>
    %cst_43 = arith.constant dense<0.000000e+00> : vector<8x128xf32>
    %133 = tpu.matmul %131, %132, %cst_43 {dimension_numbers = #tpu.dot_dimension_numbers<[1], [0], [0], [1], [0, 0, 1, 1], [], []>} : vector<8x192xbf16>, vector<192x128xbf16>, vector<8x128xf32> -> vector<8x128xf32>
    %cst_44 = arith.constant 0.000000e+00 : f32
    %134 = vector.broadcast %cst_44 : f32 to vector<8x128xf32>
    %135 = arith.maximumf %133, %134 : vector<8x128xf32>
    %136 = tpu.iota {dimensions = array<i32: 0>} : vector<4x8xi32>
    %137 = tpu.iota {dimensions = array<i32: 1>} : vector<4x8xi32>
    %c2_i32_45 = arith.constant 2 : i32
    %138 = vector.broadcast %c2_i32_45 : i32 to vector<4x8xi32>
    %139 = arith.muli %138, %136 : vector<4x8xi32>
    %c-1_i32_46 = arith.constant -1 : i32
    %140 = vector.broadcast %c-1_i32_46 : i32 to vector<4x8xi32>
    %141 = arith.addi %139, %140 : vector<4x8xi32>
    %142 = arith.cmpi eq, %137, %141 : vector<4x8xi32>
    %143 = arith.extui %142 : vector<4x8xi1> to vector<4x8xi32>
    %144 = arith.sitofp %143 : vector<4x8xi32> to vector<4x8xf32>
    %cst_47 = arith.constant dense<0.000000e+00> : vector<4x128xf32>
    %145 = tpu.matmul %144, %135, %cst_47 {dimension_numbers = #tpu.dot_dimension_numbers<[1], [0], [0], [1], [0, 0, 1, 1], [], []>} : vector<4x8xf32>, vector<8x128xf32>, vector<4x128xf32> -> vector<4x128xf32>
    %146 = tpu.iota {dimensions = array<i32: 0>} : vector<4x8xi32>
    %147 = tpu.iota {dimensions = array<i32: 1>} : vector<4x8xi32>
    %c2_i32_48 = arith.constant 2 : i32
    %148 = vector.broadcast %c2_i32_48 : i32 to vector<4x8xi32>
    %149 = arith.muli %148, %146 : vector<4x8xi32>
    %c0_i32_49 = arith.constant 0 : i32
    %150 = vector.broadcast %c0_i32_49 : i32 to vector<4x8xi32>
    %151 = arith.addi %149, %150 : vector<4x8xi32>
    %152 = arith.cmpi eq, %147, %151 : vector<4x8xi32>
    %153 = arith.extui %152 : vector<4x8xi1> to vector<4x8xi32>
    %154 = arith.sitofp %153 : vector<4x8xi32> to vector<4x8xf32>
    %cst_50 = arith.constant dense<0.000000e+00> : vector<4x128xf32>
    %155 = tpu.matmul %154, %135, %cst_50 {dimension_numbers = #tpu.dot_dimension_numbers<[1], [0], [0], [1], [0, 0, 1, 1], [], []>} : vector<4x8xf32>, vector<8x128xf32>, vector<4x128xf32> -> vector<4x128xf32>
    %156 = tpu.iota {dimensions = array<i32: 0>} : vector<4x8xi32>
    %157 = tpu.iota {dimensions = array<i32: 1>} : vector<4x8xi32>
    %c2_i32_51 = arith.constant 2 : i32
    %158 = vector.broadcast %c2_i32_51 : i32 to vector<4x8xi32>
    %159 = arith.muli %158, %156 : vector<4x8xi32>
    %c1_i32_52 = arith.constant 1 : i32
    %160 = vector.broadcast %c1_i32_52 : i32 to vector<4x8xi32>
    %161 = arith.addi %159, %160 : vector<4x8xi32>
    %162 = arith.cmpi eq, %157, %161 : vector<4x8xi32>
    %163 = arith.extui %162 : vector<4x8xi1> to vector<4x8xi32>
    %164 = arith.sitofp %163 : vector<4x8xi32> to vector<4x8xf32>
    %cst_53 = arith.constant dense<0.000000e+00> : vector<4x128xf32>
    %165 = tpu.matmul %164, %135, %cst_53 {dimension_numbers = #tpu.dot_dimension_numbers<[1], [0], [0], [1], [0, 0, 1, 1], [], []>} : vector<4x8xf32>, vector<8x128xf32>, vector<4x128xf32> -> vector<4x128xf32>
    %166 = tpu.concatenate %145, %155, %165 in 1 : vector<4x128xf32>, vector<4x128xf32>, vector<4x128xf32> -> vector<4x384xf32>
    %167 = arith.truncf %166 : vector<4x384xf32> to vector<4x384xbf16>
    %c0_54 = arith.constant 0 : index
    %c0_55 = arith.constant 0 : index
    %168 = vector.load %arg6[%c0_54, %c0_55] : memref<384x256xbf16, #tpu.memory_space<vmem>>, vector<384x256xbf16>
    %cst_56 = arith.constant dense<0.000000e+00> : vector<4x256xf32>
    %169 = tpu.matmul %167, %168, %cst_56 {dimension_numbers = #tpu.dot_dimension_numbers<[1], [0], [0], [1], [0, 0, 1, 1], [], []>} : vector<4x384xbf16>, vector<384x256xbf16>, vector<4x256xf32> -> vector<4x256xf32>
    %cst_57 = arith.constant 0.000000e+00 : f32
    %170 = vector.broadcast %cst_57 : f32 to vector<4x256xf32>
    %171 = arith.maximumf %169, %170 : vector<4x256xf32>
    %cst_58 = arith.constant dense<0.000000e+00> : vector<256xf32>
    %172 = vector.multi_reduction <add>, %171, %cst_58 [0] : vector<4x256xf32> to vector<256xf32>
    %173 = vector.shape_cast %172 : vector<256xf32> to vector<1x256xf32>
    %cst_59 = arith.constant 4.000000e+00 : f32
    %174 = vector.broadcast %cst_59 : f32 to vector<1x256xf32>
    %175 = arith.divf %173, %174 : vector<1x256xf32>
    %cst_60 = arith.constant dense<0.000000e+00> : vector<1xf32>
    %176 = vector.multi_reduction <add>, %175, %cst_60 [1] : vector<1x256xf32> to vector<1xf32>
    %177 = vector.shape_cast %176 : vector<1xf32> to vector<1x1xf32>
    %cst_61 = arith.constant 2.560000e+02 : f32
    %178 = vector.broadcast %cst_61 : f32 to vector<1x1xf32>
    %179 = arith.divf %177, %178 : vector<1x1xf32>
    %180 = vector.broadcast %179 : vector<1x1xf32> to vector<1x256xf32>
    %181 = arith.subf %175, %180 : vector<1x256xf32>
    %182 = arith.mulf %181, %181 : vector<1x256xf32>
    %cst_62 = arith.constant dense<0.000000e+00> : vector<1xf32>
    %183 = vector.multi_reduction <add>, %182, %cst_62 [1] : vector<1x256xf32> to vector<1xf32>
    %184 = vector.shape_cast %183 : vector<1xf32> to vector<1x1xf32>
    %cst_63 = arith.constant 2.560000e+02 : f32
    %185 = vector.broadcast %cst_63 : f32 to vector<1x1xf32>
    %186 = arith.divf %184, %185 : vector<1x1xf32>
    %187 = vector.broadcast %179 : vector<1x1xf32> to vector<1x256xf32>
    %188 = arith.subf %175, %187 : vector<1x256xf32>
    %cst_64 = arith.constant 9.99999974E-6 : f32
    %189 = vector.broadcast %cst_64 : f32 to vector<1x1xf32>
    %190 = arith.addf %186, %189 : vector<1x1xf32>
    %191 = math.rsqrt %190 : vector<1x1xf32>
    %192 = vector.broadcast %191 : vector<1x1xf32> to vector<1x256xf32>
    %193 = arith.mulf %188, %192 : vector<1x256xf32>
    %c0_65 = arith.constant 0 : index
    %c0_66 = arith.constant 0 : index
    %194 = vector.load %arg7[%c0_65, %c0_66] : memref<1x256xf32, #tpu.memory_space<vmem>>, vector<1x256xf32>
    %195 = arith.mulf %193, %194 : vector<1x256xf32>
    %c0_67 = arith.constant 0 : index
    %c0_68 = arith.constant 0 : index
    %196 = vector.load %arg8[%c0_67, %c0_68] : memref<1x256xf32, #tpu.memory_space<vmem>>, vector<1x256xf32>
    %197 = arith.addf %195, %196 : vector<1x256xf32>
    %198 = arith.truncf %197 : vector<1x256xf32> to vector<1x256xbf16>
    %c0_69 = arith.constant 0 : index
    %c0_70 = arith.constant 0 : index
    %199 = vector.load %arg9[%c0_69, %c0_70] : memref<256x10xbf16, #tpu.memory_space<vmem>>, vector<256x10xbf16>
    %cst_71 = arith.constant dense<0.000000e+00> : vector<1x10xf32>
    %200 = tpu.matmul %198, %199, %cst_71 {dimension_numbers = #tpu.dot_dimension_numbers<[1], [0], [0], [1], [0, 0, 1, 1], [], []>} : vector<1x256xbf16>, vector<256x10xbf16>, vector<1x10xf32> -> vector<1x10xf32>
    %c0_72 = arith.constant 0 : index
    %c0_73 = arith.constant 0 : index
    %201 = vector.load %arg10[%c0_72, %c0_73] : memref<1x10xf32, #tpu.memory_space<vmem>>, vector<1x10xf32>
    %202 = arith.addf %200, %201 : vector<1x10xf32>
    %c0_74 = arith.constant 0 : index
    %c0_75 = arith.constant 0 : index
    %c0_76 = arith.constant 0 : index
    %203 = vector.load %arg11[%c0_74, %c0_75, %c0_76] : memref<1x1x10xf32, #tpu.memory_space<vmem>>, vector<1x1x10xf32>
    %204 = vector.shape_cast %203 : vector<1x1x10xf32> to vector<1x10xf32>
    %205 = vector.shape_cast %202 : vector<1x10xf32> to vector<1x1x10xf32>
    tpu.vector_store %arg11[%c0_74, %c0_75, %c0_76], %205 {strides = array<i32>} : memref<1x1x10xf32, #tpu.memory_space<vmem>>, vector<1x1x10xf32>,
    return
  }
  func.func @transform_0(%arg0: i32) -> (i32, i32, i32) {
    %c0_i32 = arith.constant 0 : i32
    %c0_i32_0 = arith.constant 0 : i32
    %c0_i32_1 = arith.constant 0 : i32
    return %arg0, %c0_i32, %c0_i32_0 : i32, i32, i32
  }
  func.func @transform_1(%arg0: i32) -> (i32, i32) {
    %c0_i32 = arith.constant 0 : i32
    %c0_i32_0 = arith.constant 0 : i32
    %c0_i32_1 = arith.constant 0 : i32
    return %c0_i32, %c0_i32_0 : i32, i32
  }
  func.func @transform_2(%arg0: i32) -> (i32, i32) {
    %c0_i32 = arith.constant 0 : i32
    %c0_i32_0 = arith.constant 0 : i32
    %c0_i32_1 = arith.constant 0 : i32
    return %c0_i32, %c0_i32_0 : i32, i32
  }
  func.func @transform_3(%arg0: i32) -> (i32, i32) {
    %c0_i32 = arith.constant 0 : i32
    %c0_i32_0 = arith.constant 0 : i32
    %c0_i32_1 = arith.constant 0 : i32
    return %c0_i32, %c0_i32_0 : i32, i32
  }
  func.func @transform_4(%arg0: i32) -> (i32, i32) {
    %c0_i32 = arith.constant 0 : i32
    %c0_i32_0 = arith.constant 0 : i32
    %c0_i32_1 = arith.constant 0 : i32
    return %c0_i32, %c0_i32_0 : i32, i32
  }
  func.func @transform_5(%arg0: i32) -> (i32, i32) {
    %c0_i32 = arith.constant 0 : i32
    %c0_i32_0 = arith.constant 0 : i32
    %c0_i32_1 = arith.constant 0 : i32
    return %c0_i32, %c0_i32_0 : i32, i32
  }
  func.func @transform_6(%arg0: i32) -> (i32, i32) {
    %c0_i32 = arith.constant 0 : i32
    %c0_i32_0 = arith.constant 0 : i32
    %c0_i32_1 = arith.constant 0 : i32
    return %c0_i32, %c0_i32_0 : i32, i32
  }
  func.func @transform_7(%arg0: i32) -> (i32, i32) {
    %c0_i32 = arith.constant 0 : i32
    %c0_i32_0 = arith.constant 0 : i32
    %c0_i32_1 = arith.constant 0 : i32
    return %c0_i32, %c0_i32_0 : i32, i32
  }
  func.func @transform_8(%arg0: i32) -> (i32, i32) {
    %c0_i32 = arith.constant 0 : i32
    %c0_i32_0 = arith.constant 0 : i32
    %c0_i32_1 = arith.constant 0 : i32
    return %c0_i32, %c0_i32_0 : i32, i32
  }
  func.func @transform_9(%arg0: i32) -> (i32, i32) {
    %c0_i32 = arith.constant 0 : i32
    %c0_i32_0 = arith.constant 0 : i32
    %c0_i32_1 = arith.constant 0 : i32
    return %c0_i32, %c0_i32_0 : i32, i32
  }
  func.func @transform_10(%arg0: i32) -> (i32, i32, i32) {
    %c0_i32 = arith.constant 0 : i32
    %c0_i32_0 = arith.constant 0 : i32
    %c0_i32_1 = arith.constant 0 : i32
    return %arg0, %c0_i32, %c0_i32_0 : i32, i32, i32
  }
}

</mosaic_0001>

<bundles_post_ra>
// kernel: convmsanet_forward.1
= control target key start
LH: loop header
LB: loop body
LE: loop exit
PB: predicated region body
PF: predicated region fallthrough
CT: control target
= control target key end

     0   :  { %15 = vsyncpa [#allocation3], 0  ;;  %s4317_s0 = inlined_call_operand.vmem [shape: bf16[2,64,7], index: 0, kind: input, shape index: {}]   ;;  %s4318_s1 = inlined_call_operand.vmem [shape: bf16[7,16], index: 1, kind: input, shape index: {}]   ;;  %s4319_s2 = inlined_call_operand.vmem [shape: bf16[48,32], index: 2, kind: input, shape index: {}]   ;;  %s4320_s3 = inlined_call_operand.vmem [shape: bf16[96,64], index: 3, kind: input, shape index: {}]   ;;  %s4321_s4 = inlined_call_operand.vmem [shape: bf16[192,128], index: 4, kind: input, shape index: {}]   ;;  %s4322_s5 = inlined_call_operand.vmem [shape: bf16[384,256], index: 5, kind: input, shape index: {}]   ;;  %s4323_s6 = inlined_call_operand.vmem [shape: f32[1,256], index: 6, kind: input, shape index: {}]   ;;  %s4324_s7 = inlined_call_operand.vmem [shape: f32[1,256], index: 7, kind: input, shape index: {}]   ;;  %s4325_s8 = inlined_call_operand.vmem [shape: bf16[256,10], index: 8, kind: input, shape index: {}]   ;;  %s4326_s9 = inlined_call_operand.vmem [shape: f32[1,10], index: 9, kind: input, shape index: {}]   ;;  %s4327_s10 = inlined_call_operand.hbm [shape: f32[2,1,10], index: 10, kind: output, shape index: {}]  }
   0x1   :  { %17 = vsyncpa [#allocation3 + $0x1], 0  ;;  %s3737_s13 = smov 0   ;;  %s3739_s14 = smov 0  }
   0x2   :  { %s3741_s15 = smov 0   ;;  %s3743_s16 = smov 0  }
   0x3 LB: > { %s3758_s17 = sadd.s32 4294967295, %s3671_s16   ;;  %s2826_s18 = sadd.s32 4294967294, %s3671_s16   ;;  %s3671_s16 = sphi %s3743_s16, %s4333_s16   ;;  %s3667_s15 = sphi %s3741_s15, %s4332_s15   ;;  %s3663_s14 = sphi %s3739_s14, %s4331_s14   ;;  %s3659_s13 = sphi %s3737_s13, %s4330_s13  }
   0x4   : > { %s3762_s19 = sadd.s32 1, %s3671_s16   ;;  %s245_s20 = sadd.s32 1, %s3667_s15 }
   0x5   : > { %s242_s21 = ssub.s32 %s3671_s16, %s3762_s19  ;;  %p255_p0 = scmp.ne.s32.totalorder %s3667_s15, %s3663_s14 }
   0x6   : > { %p243_p1 = scmp.eq.s32.totalorder %s242_s21, 0  ;;  %p256_p2 = scmp.eq.s32.totalorder %s3758_s17, 1 }
   0x7   : > { %p261_p3 = scmp.ne.s32.totalorder %s3663_s14, %s3659_s13  ;;  %p262_p4 = scmp.eq.s32.totalorder %s2826_s18, 1 }
   0x8   : > { %s3773_s22 = scalar_select %p243_p1, %s3667_s15, %s245_s20  }
   0x9   : > { %p3775_p5 = por %p256_p2, %p255_p0  ;;  %p3779_p6 = por %p262_p4, %p261_p3 }
   0xa   : > { %p2829_p7 = scmp.ge.s32.totalorder %s3671_s16, 1  ;;  %p315_p8 = scmp.lt.s32.totalorder %s3671_s16, 3 }
   0xc   : > { %p316_p9 = pnand %p2829_p7, %p315_p8 }
   0xd   : > { %v366_v0 = vld [vmem:[%s4318_s1] sm:$0xf] (!%p316_p9)  ;;  %vm400_vm0 = vcmask (!%p316_p9), 1042432   ;;  %vm401_vm1 = vcmask (!%p316_p9), 1043456   ;;  %p352_p10 = scmp.lt.s32.totalorder (!%p316_p9), %s3758_s17, 1  ;;  %v3673_v1 = vmov (!%p316_p9), 65535   ;;  %v472_v9 = vlaneseq (!%p316_p9) }
   0xe   : > { %319 = sbr.rel (%p316_p9) target bundleno = 3228 (0xc9c), region = 60  ;;  %v402_v2 = vsel (!%p316_p9), %vm400_vm0, 4294967295, %v3673_v1  ;;  %vm387_vm2 = vcmask (!%p316_p9), 56320   ;;  %v3674_v15 = vmov (!%p316_p9), 0.0   ;;  %vm507_vm5 = vcmask (!%p316_p9), 523264   ;;  %s3675_s12 = smov (!%p316_p9), 16  }
   0xf   : > { %v403_v3 = vsel (!%p316_p9), %vm401_vm1, %v402_v2, 0  ;;  %v3794_v10 = vshrl.u32 (!%p316_p9), %v472_v9, 7  ;;  %v3799_v13 = vand.u32 (!%p316_p9), 127, %v472_v9  ;;  %s2989_s26 = sshll.u32 (!%p316_p9), %s3758_s17, 4  ;;  %s3681_s20 = smov (!%p316_p9), [#allocation2]  }
  0x10   : > { %v405_v4 = vand.u32 (!%p316_p9), %v403_v3, %v366_v0  ;;  %s3613_s21 = sshll.u32 (!%p316_p9), %s3681_s20, 4  ;;  %s3614_s21 = int_to_ptr.vmem [resolvable:$false] %s3613_s21 }
  0x11   : > { %v479_v11 = vmul.u32 (!%p316_p9), 2, %v3794_v10  ;;  %v3813_v18 = vadd.s32 (!%p316_p9), 8, %v3794_v10  ;;  %v3816_v19 = vadd.s32 (!%p316_p9), 16, %v3794_v10  ;;  %v3820_v24 = vadd.s32 (!%p316_p9), 24, %v3794_v10  ;;  %s3615_s25 = scalar_lea.vmem (!%p316_p9), %s3614_s21, 32 }
  0x12   : > { %3117 = vmatprep.subr.bf16.mxu0 (!%p316_p9), %v405_v4  ;;  %v843_v60 = vadd.s32 (!%p316_p9), 4294967295, %v3794_v10 }
  0x13   : > { %3118 = vmatpush3.bf16.msra.mxu0 (!%p316_p9), %v405_v4  ;;  %v3797_v12 = vadd.s32 (!%p316_p9), 4294967295, %v479_v11  ;;  %vm605_vm6 = vcmp.eq.s32.totalorder (!%p316_p9), %v3799_v13, %v479_v11  ;;  %v480_v23 = vmul.u32 (!%p316_p9), 2, %v3813_v18  ;;  %v481_v27 = vmul.u32 (!%p316_p9), 2, %v3816_v19 }
  0x14   : > { %v3808_v17 = vsel (!%p316_p9), %vm605_vm6, 1.0, %v3674_v15  ;;  %v482_v30 = vmul.u32 (!%p316_p9), 2, %v3820_v24  ;;  %v3833_v38 = vadd.s32 (!%p316_p9), 1, %v479_v11 }
  0x15   : > { %s353_s27 = scalar_select %p352_p10, %s3758_s17, 1  ;;  %vm487_vm3 = vcmp.gt.s32.totalorder %v3797_v12, 0  ;;  %v3825_v29 = vadd.s32 4294967295, %v480_v23  ;;  %v2842_v31 = vadd.s32 4294967295, %v481_v27  ;;  %vm606_vm12 = vcmp.eq.s32.totalorder %v3799_v13, %v480_v23 }
  0x16   : > { %v488_v14 = vsel %vm487_vm3, %v3797_v12, 0  ;;  %v2843_v35 = vadd.s32 4294967295, %v482_v30  ;;  %vm718_vm10 = vcmp.lt.s32.totalorder %v3833_v38, 63  ;;  %vm607_vm14 = vcmp.eq.s32.totalorder %v3799_v13, %v481_v27 }
  0x17   : > { %s2992_s28 = sshll.u32 %s353_s27, 5  ;;  %vm495_vm4 = vcmp.eq.s32.totalorder %v3799_v13, %v488_v14  ;;  %vm489_vm7 = vcmp.gt.s32.totalorder %v3825_v29, 0  ;;  %vm491_vm8 = vcmp.gt.s32.totalorder %v2842_v31, 0  ;;  %v719_v43 = vsel %vm718_vm10, %v3833_v38, 63 }
  0x18   : > { %s356_s11 = scalar_lea.vmem %s4317_s0, %s2992_s28  ;;  %v2844_v16 = vsel %vm495_vm4, 1.0, %v3674_v15  ;;  %v490_v40 = vsel %vm489_vm7, %v3825_v29, 0  ;;  %v492_v41 = vsel %vm491_vm8, %v2842_v31, 0  ;;  %vm493_vm9 = vcmp.gt.s32.totalorder %v2843_v35, 0  ;;  %s3676_s28 = smov 32  }
  0x19   : > { %v3494_v5 = vld [vmem:[%s356_s11] sm:$0xff]   ;;  %v3495_v6 = vld [vmem:[%s356_s11 + $0x8] sm:$0xff]   ;;  %v3496_v7 = vld [vmem:[%s356_s11 + $0x10] sm:$0xff]   ;;  %3143 = vmatprep.mubr.msk.f32.mxu1 %vm507_vm5, %v2844_v16  ;;  %vm496_vm11 = vcmp.eq.s32.totalorder %v3799_v13, %v490_v40  ;;  %vm497_vm13 = vcmp.eq.s32.totalorder %v3799_v13, %v492_v41  ;;  %v494_v42 = vsel %vm493_vm9, %v2843_v35, 0  ;;  %v3844_v45 = vsel %vm606_vm12, 1.0, %v3674_v15 }
  0x1a   : > { %3119 = vmatprep.mubr.msk.bf16.mxu0 %vm387_vm2, %v3494_v5  ;;  %v3497_v8 = vld [vmem:[%s356_s11 + $0x18] sm:$0xff]   ;;  %v2845_v44 = vsel %vm496_vm11, 1.0, %v3674_v15  ;;  %v2846_v46 = vsel %vm497_vm13, 1.0, %v3674_v15  ;;  %vm498_vm15 = vcmp.eq.s32.totalorder %v3799_v13, %v494_v42  ;;  %vm608_vm0 = vcmp.eq.s32.totalorder %v3799_v13, %v482_v30  ;;  %s3678_s11 = smov 64  }
  0x1b   : > { %3120 = vmatmul.mubr.msk.bf16.vlgmr.msra.gmra.mrb[0].mxu0 %vm387_vm2, %v3495_v6  ;;  %v2854_v47 = vsel %vm607_vm14, 1.0, %v3674_v15  ;;  %v3854_v48 = vadd.s32 1, %v480_v23  ;;  %v2847_v49 = vsel %vm498_vm15, 1.0, %v3674_v15  ;;  %v2855_v50 = vsel %vm608_vm0, 1.0, %v3674_v15 }
  0x1c   : > { %3123 = vmatprep.mubr.msk.bf16.mxu0 %vm387_vm2, %v3496_v7  ;;  %v716_v51 = vadd.s32 1, %v481_v27  ;;  %v717_v53 = vadd.s32 1, %v482_v30  ;;  %vm847_vm10 = vcmp.eq.s32.totalorder %v3799_v13, %v843_v60  ;;  %vm859_vm11 = vcmask 261120  }
  0x1d   : > { %vm720_vm3 = vcmp.lt.s32.totalorder %v3854_v48, 63  ;;  %v2868_v61 = vsel %vm847_vm10, 1.0, %v3674_v15  ;;  %v960_v42 = vadd.s32 1, %v3820_v24  ;;  %vm1366_vm10 = vcmp.eq.s32.totalorder %v3799_v13, %v3854_v48 }
  0x1e   : > { %vm722_vm4 = vcmp.lt.s32.totalorder %v716_v51, 63  ;;  %v721_v54 = vsel %vm720_vm3, %v3854_v48, 63  ;;  %vm724_vm6 = vcmp.lt.s32.totalorder %v717_v53, 63  ;;  %v3504_v48 = vld [vmem:[%s4320_s3 + $0x18] sm:$0xff]  }
  0x1f   : > { %v723_v55 = vsel %vm722_vm4, %v716_v51, 63  ;;  %vm727_vm7 = vcmp.eq.s32.totalorder %v3799_v13, %v721_v54  ;;  %v725_v56 = vsel %vm724_vm6, %v717_v53, 63  ;;  %vm964_vm3 = vcmp.eq.s32.totalorder %v3799_v13, %v960_v42 }
  0x20   : > { %vm728_vm8 = vcmp.eq.s32.totalorder %v3799_v13, %v723_v55  ;;  %v2861_v57 = vsel %vm727_vm7, 1.0, %v3674_v15  ;;  %vm729_vm9 = vcmp.eq.s32.totalorder %v3799_v13, %v725_v56  ;;  %vm1102_vm4 = vcmask 130048  }
  0x21   : > { %v2862_v58 = vsel %vm728_vm8, 1.0, %v3674_v15  ;;  %v2863_v59 = vsel %vm729_vm9, 1.0, %v3674_v15  ;;  %vm1137_vm6 = vcmask 392192   ;;  %vm1199_vm7 = vcmp.eq.s32.totalorder %v3799_v13, %v3797_v12 }
  0x22   : > { %vm1200_vm8 = vcmp.eq.s32.totalorder %v3799_v13, %v3825_v29  ;;  %vm1365_vm9 = vcmp.eq.s32.totalorder %v3799_v13, %v3833_v38  ;;  %v2896_v29 = vsel %vm1366_vm10, 1.0, %v3674_v15  ;;  %v3501_v38 = vld [vmem:[%s4320_s3] sm:$0xff]  }
  0x23   : > { %3124 = vmatmul.mubr.msk.bf16.gmra.mrb[4].mxu0 %vm387_vm2, %v3497_v8  ;;  %vm726_vm2 = vcmp.eq.s32.totalorder %v3799_v13, %v719_v43  ;;  %v2879_v43 = vsel %vm964_vm3, 1.0, %v3674_v15  ;;  %v2890_v12 = vsel %vm1200_vm8, 1.0, %v3674_v15 }
  0x24   : > { %3165 = vmatprep.mubr.msk.f32.mxu0 %vm507_vm5, %v3808_v17  ;;  %v2860_v52 = vsel %vm726_vm2, 1.0, %v3674_v15 }
  0xee   : > { %v3121_v20 = vpop.f32.mrb[0].mxu0 }
  0xef   : > { %v441_v21 = vpop.f32.mrb[1].mxu0 }
  0xf0   : > { %v3122_v22 = vpop.f32.mrb[2].mxu0 }
  0xf1   : > { %v3822_v25 = vpack.c.bf16 %v3122_v22, %v3121_v20  ;;  %v444_v26 = vpop.f32.mrb[3].mxu0 }
  0xf2   : > { %v3316_v28 = vpack.c.bf16 %v444_v26, %v441_v21  ;;  %v844_v26 = vadd.s32 4294967295, %v3813_v18 }
  0xf4   : > { %3317 = vmatprep.subr.bf16.mxu1 %v3316_v28  ;;  %3333 = vmatprep.subr.bf16.mxu0 %v3316_v28  ;;  %vm848_vm12 = vcmp.eq.s32.totalorder %v3799_v13, %v844_v26 }
  0xf5   : > { %3319 = vmatpush3.bf16.msra.mxu1 %v3316_v28  ;;  %3335 = vmatpush3.bf16.msra.mxu0 %v3316_v28  ;;  %v2869_v35 = vsel %vm848_vm12, 1.0, %v3674_v15  ;;  %vm3677_vm12 = vmmov 0  }
  0xf6   : > { %v3125_v32 = vpop.f32.mrb[4].mxu0  ;;  %3321 = vmatprep.subr.bf16.mxu1 %v3822_v25  ;;  %3337 = vmatprep.subr.bf16.mxu0 %v3822_v25 }
  0xf7   : > { %v457_v33 = vpop.f32.mrb[5].mxu0 }
  0xf8   : > { %v3126_v34 = vpop.f32.mrb[6].mxu0 }
  0xf9   : > { %v3328_v36 = vpack.c.bf16 %v3126_v34, %v3125_v32  ;;  %v460_v37 = vpop.f32.mrb[7].mxu0  ;;  %3323 = vmatpush3.bf16.msra.mxu1 %v3822_v25  ;;  %3339 = vmatpush3.bf16.msra.mxu0 %v3822_v25  ;;  %v957_v34 = vadd.s32 1, %v3794_v10 }
  0xfa   : > { %v3324_v39 = vpack.c.bf16 %v460_v37, %v457_v33  ;;  %v846_v33 = vadd.s32 4294967295, %v3820_v24  ;;  %v958_v37 = vadd.s32 1, %v3813_v18  ;;  %v3498_v24 = vld [vmem:[%s4319_s2] sm:$0xff]  }
  0xfb   : > { %vm961_vm15 = vcmp.eq.s32.totalorder %v3799_v13, %v957_v34 }
  0xfc   : > { %3325 = vmatprep.subr.bf16.mxu1 %v3324_v39  ;;  %3341 = vmatprep.subr.bf16.mxu0 %v3324_v39  ;;  %vm850_vm14 = vcmp.eq.s32.totalorder %v3799_v13, %v846_v33  ;;  %v2876_v41 = vsel %vm961_vm15, 1.0, %v3674_v15  ;;  %vm962_vm0 = vcmp.eq.s32.totalorder %v3799_v13, %v958_v37 }
  0xfd   : > { %3327 = vmatpush3.bf16.msra.mxu1 %v3324_v39  ;;  %3343 = vmatpush3.bf16.msra.mxu0 %v3324_v39  ;;  %v2871_v40 = vsel %vm850_vm14, 1.0, %v3674_v15  ;;  %v2877_v18 = vsel %vm962_vm0, 1.0, %v3674_v15 }
  0xfe   : > { %3329 = vmatprep.subr.bf16.mxu1 %v3328_v36  ;;  %3345 = vmatprep.subr.bf16.mxu0 %v3328_v36 }
 0x101   : > { %3331 = vmatpush3.bf16.msra.mxu1 %v3328_v36  ;;  %3347 = vmatpush3.bf16.msra.mxu0 %v3328_v36 }
 0x102   : > { %3349 = vmatprep.subr.bf16.mxu1 %v3316_v28 }
 0x104   : > { %3144 = vmatmul.mubr.msk.f32.vlgmr.msra.gmra.mrb[0].mxu1 %vm507_vm5, %v2845_v44  ;;  %3166 = vmatmul.mubr.msk.f32.vlgmr.msra.gmra.mrb[8].mxu0 %vm507_vm5, %v3844_v45  ;;  %v3499_v44 = vld [vmem:[%s4319_s2 + $0x8] sm:$0xff]  }
 0x105   : > { %3351 = vmatpush3.bf16.msra.mxu1 %v3316_v28  ;;  %3146 = vmatprep.mubr.msk.f32.mxu1 %vm507_vm5, %v2846_v46  ;;  %v845_v28 = vadd.s32 4294967295, %v3816_v19 }
 0x106   : > { %3353 = vmatprep.subr.bf16.mxu1 %v3822_v25  ;;  %3168 = vmatprep.mubr.msk.f32.mxu0 %vm507_vm5, %v2854_v47 }
 0x107   : > { %vm849_vm13 = vcmp.eq.s32.totalorder %v3799_v13, %v845_v28 }
 0x108   : > { %3147 = vmatmul.mubr.msk.f32.gmra.mrb[2].mxu1 %vm507_vm5, %v2847_v49  ;;  %3169 = vmatmul.mubr.msk.f32.gmra.mrb[10].mxu0 %vm507_vm5, %v2855_v50  ;;  %v3500_v49 = vld [vmem:[%s4319_s2 + $0x10] sm:$0xff]  }
 0x109   : > { %3355 = vmatpush3.bf16.msra.mxu1 %v3822_v25  ;;  %3187 = vmatprep.mubr.msk.f32.mxu1 %vm507_vm5, %v2860_v52 }
 0x10a   : > { %3357 = vmatprep.subr.bf16.mxu1 %v3324_v39  ;;  %3201 = vmatprep.mubr.msk.f32.mxu0 %vm859_vm11, %v2868_v61 }
 0x10d   : > { %3359 = vmatpush3.bf16.msra.mxu1 %v3324_v39  ;;  %v959_v39 = vadd.s32 1, %v3816_v19 }
 0x10e   : > { %3361 = vmatprep.subr.bf16.mxu1 %v3328_v36 }
 0x10f   : > { %vm963_vm2 = vcmp.eq.s32.totalorder %v3799_v13, %v959_v39  ;;  %v3503_v13 = vld [vmem:[%s4320_s3 + $0x10] sm:$0xff]  }
 0x110   : > { %v2878_v19 = vsel %vm963_vm2, 1.0, %v3674_v15 }
 0x111   : > { %3363 = vmatpush3.bf16.msra.mxu1 %v3328_v36  ;;  %v2870_v36 = vsel %vm849_vm13, 1.0, %v3674_v15  ;;  %vm1521_vm13 = vcmask 785408  }
 0x112   : > { %3221 = vmatprep.subr.bf16.mxu1 %v3498_v24 }
 0x114   : > { %3188 = vmatmul.mubr.msk.f32.vlgmr.msra.gmra.mrb[4].mxu1 %vm507_vm5, %v2861_v57 }
 0x115   : > { %3190 = vmatprep.mubr.msk.f32.mxu1 %vm507_vm5, %v2862_v58  ;;  %3222 = vmatpush3.bf16.msra.mxu1 %v3498_v24 }
 0x116   : > { %3223 = vmatprep.subr.bf16.mxu1 %v3499_v44 }
 0x118   : > { %3191 = vmatmul.mubr.msk.f32.gmra.mrb[6].mxu1 %vm507_vm5, %v2863_v59 }
 0x119   : > { %3224 = vmatpush3.bf16.msra.mxu1 %v3499_v44 }
 0x11a   : > { %3225 = vmatprep.subr.bf16.mxu1 %v3500_v49 }
 0x11d   : > { %3226 = vmatpush3.bf16.msra.mxu1 %v3500_v49 }
 0x11e   : > { %3264 = vmatprep.subr.bf16.mxu1 %v3674_v15 }
 0x1d7   : > { %v3145_v62 = vpop.f32.mrb[0].mxu1  ;;  %v3167_v63 = vpop.f32.mrb[8].mxu0 }
 0x1d8   : > { %v586_v0 = vpop.f32.mrb[1].mxu1  ;;  %v695_v1 = vpop.f32.mrb[9].mxu0 }
 0x1db   : > { %v3148_v2 = vpop.f32.mrb[2].mxu1  ;;  %v3170_v3 = vpop.f32.mrb[10].mxu0 }
 0x1dc   : > { %v596_v4 = vpop.f32.mrb[3].mxu1  ;;  %v705_v5 = vpop.f32.mrb[11].mxu0 }
 0x1e7   : > { %v3189_v6 = vpop.f32.mrb[4].mxu1 }
 0x1e8   : > { %v836_v7 = vmax.f32 %v3167_v63, %v3189_v6  ;;  %v816_v8 = vpop.f32.mrb[5].mxu1 }
 0x1e9   : > { %v835_v9 = vmax.f32 %v695_v1, %v816_v8 }
 0x1ea   : > { %v840_v11 = vmax.f32 %v3145_v62, %v836_v7 }
 0x1eb   : > { %v839_v14 = vmax.f32 %v586_v0, %v835_v9  ;;  %v3192_v16 = vpop.f32.mrb[6].mxu1 }
 0x1ec   : > { %v838_v20 = vmax.f32 %v3170_v3, %v3192_v16  ;;  %v826_v21 = vpop.f32.mrb[7].mxu1 }
 0x1ed   : > { %v3364_v22 = vpack.c.bf16 %v840_v11, %v839_v14  ;;  %v837_v23 = vmax.f32 %v705_v5, %v826_v21  ;;  %v3464_v25 = vpack.i.bf16 %v840_v11, %v839_v14 }
 0x1ee   : > { %v842_v27 = vmax.f32 %v3148_v2, %v838_v20 }
 0x1ef   : > { %v841_v30 = vmax.f32 %v596_v4, %v837_v23  ;;  %3465 = vrot.lane.b32.xlu0 %v3464_v25, %s3675_s12  ;;  %3365 = vmatprep.subr.bf16.mxu0 %v3364_v22  ;;  %v3932_v23 = vsel %vm1199_vm7, 1.0, %v3674_v15 }
 0x1f0   : > { %3367 = vmatpush3.bf16.msra.mxu0 %v3364_v22 }
 0x1f1   : > { %v3368_v31 = vpack.c.bf16 %v842_v27, %v841_v30  ;;  %v3469_v32 = vpack.i.bf16 %v842_v27, %v841_v30 }
 0x1f3   : > { %3470 = vrot.lane.b32.xlu0 %v3469_v32, %s3675_s12  ;;  %3369 = vmatprep.subr.bf16.mxu0 %v3368_v31  ;;  %s4275_s12 = scalar_lea.hbm %s4327_s10, %s2989_s26 }
 0x1f4   : > { %3371 = vmatpush3.bf16.msra.mxu0 %v3368_v31 }
 0x1f5   : > { %3373 = vmatprep.subr.bf16.mxu0 %v3364_v22 }
 0x1f7   : > { %3202 = vmatmul.mubr.msk.f32.vlgmr.msra.gmra.mrb[12].mxu0 %vm859_vm11, %v2869_v35 }
 0x1f8   : > { %3375 = vmatpush3.bf16.msra.mxu0 %v3364_v22  ;;  %3204 = vmatprep.mubr.msk.f32.mxu0 %vm859_vm11, %v2870_v36  ;;  %v3945_v36 = vsel %vm1365_vm9, 1.0, %v3674_v15 }
 0x1f9   : > { %3377 = vmatprep.subr.bf16.mxu0 %v3368_v31 }
 0x1fb   : > { %3205 = vmatmul.mubr.msk.f32.gmra.mrb[14].mxu0 %vm859_vm11, %v2871_v40  ;;  %v3505_v40 = vld [vmem:[%s4320_s3 + $0x20] sm:$0xff]  }
 0x1fc   : > { %3379 = vmatpush3.bf16.msra.mxu0 %v3368_v31  ;;  %3215 = vmatprep.mubr.msk.f32.mxu0 %vm859_vm11, %v2876_v41  ;;  %v3506_v41 = vld [vmem:[%s4320_s3 + $0x28] sm:$0xff]  }
 0x1ff   : > { %3216 = vmatmul.mubr.msk.f32.vlgmr.msra.gmra.mrb[16].mxu0 %vm859_vm11, %v2877_v18 }
 0x200   : > { %3218 = vmatprep.mubr.msk.f32.mxu0 %vm859_vm11, %v2878_v19 }
 0x203   : > { %3219 = vmatmul.mubr.msk.f32.gmra.mrb[18].mxu0 %vm859_vm11, %v2879_v43 }
 0x204   : > { %3239 = vmatprep.mubr.msk.f32.mxu0 %vm859_vm11, %v3932_v23 }
 0x261   : > { %v3466_v58 = vpop.permute.xlu0 %3465 }
 0x262   : > { %v3468_v59 = vunpack.i.h.bf16 %v3466_v58  ;;  %v3467_v60 = vunpack.i.l.bf16 %v3466_v58  ;;  %v3679_v58 = vmov 0.0|0.0  }
 0x265   : > { %v3471_v62 = vpop.permute.xlu0 %3470 }
 0x266   : > { %v3473_v5 = vunpack.i.h.bf16 %v3471_v62  ;;  %v3472_v6 = vunpack.i.l.bf16 %v3471_v62 }
 0x2ca   : > { %v3203_v46 = vpop.f32.mrb[12].mxu0 }
 0x2cb   : > { %v938_v47 = vpop.f32.mrb[13].mxu0  ;;  %v1104_v1 = vsel %vm1102_vm4, %v3203_v46, %v3468_v59 }
 0x2cc   : > { %v1103_v2 = vsel %vm1102_vm4, %v938_v47, %v3467_v60 }
 0x2ce   : > { %v3206_v50 = vpop.f32.mrb[14].mxu0 }
 0x2cf   : > { %v948_v51 = vpop.f32.mrb[15].mxu0  ;;  %v1106_v14 = vsel %vm1102_vm4, %v3206_v50, %v3473_v5  ;;  %v3509_v5 = vld [vmem:[%s4321_s4 + $0x10] sm:$0xff]  }
 0x2d0   : > { %v1105_v16 = vsel %vm1102_vm4, %v948_v51, %v3472_v6  ;;  %v3510_v6 = vld [vmem:[%s4321_s4 + $0x18] sm:$0xff]  }
 0x2d2   : > { %v3217_v52 = vpop.f32.mrb[16].mxu0 }
 0x2d3   : > { %v1051_v53 = vpop.f32.mrb[17].mxu0 }
 0x2d4   : > { %v3474_v54 = vpack.i.bf16 %v3217_v52, %v1051_v53 }
 0x2d6   : > { %3475 = vrot.lane.b32.xlu1 %v3474_v54, %s3676_s28  ;;  %v3220_v55 = vpop.f32.mrb[18].mxu0 }
 0x2d7   : > { %v1061_v56 = vpop.f32.mrb[19].mxu0 }
 0x2d8   : > { %v3479_v57 = vpack.i.bf16 %v3220_v55, %v1061_v56 }
 0x2da   : > { %3480 = vrot.lane.b32.xlu1 %v3479_v57, %s3676_s28 }
 0x348   : > { %v3476_v61 = vpop.permute.xlu1 %3475 }
 0x349   : > { %v3478_v63 = vunpack.i.h.bf16 %v3476_v61  ;;  %v3477_v0 = vunpack.i.l.bf16 %v3476_v61 }
 0x34b   : > { %v1108_v3 = vsel %vm859_vm11, %v1104_v1, %v3478_v63  ;;  %v1107_v4 = vsel %vm859_vm11, %v1103_v2, %v3477_v0  ;;  %v3507_v2 = vld [vmem:[%s4321_s4] sm:$0xff]  }
 0x34c   : > { %v1111_v7 = vpack.c.bf16 %v1108_v3, %v1107_v4  ;;  %v3481_v8 = vpop.permute.xlu1 %3480  ;;  %v3680_v3 = vmov 0   ;;  %v3508_v4 = vld [vmem:[%s4321_s4 + $0x8] sm:$0xff]  }
 0x34d   : > { %v3483_v9 = vunpack.i.h.bf16 %v3481_v8  ;;  %v3482_v11 = vunpack.i.l.bf16 %v3481_v8  ;;  %v3512_v8 = vld [vmem:[%s4321_s4 + $0x28] sm:$0xff]  }
 0x34e   : > { %3227 = vmatprep.mubr.msk.bf16.mxu1 %vm1137_vm6, %v1111_v7  ;;  %v3511_v7 = vld [vmem:[%s4321_s4 + $0x20] sm:$0xff]  }
 0x34f   : > { %v1110_v20 = vsel %vm859_vm11, %v1106_v14, %v3483_v9  ;;  %v1109_v21 = vsel %vm859_vm11, %v1105_v16, %v3482_v11  ;;  %v3513_v9 = vld [vmem:[%s4321_s4 + $0x30] sm:$0xff]   ;;  %v3514_v11 = vld [vmem:[%s4321_s4 + $0x38] sm:$0xff]   ;;  %v3515_v14 = vld [vmem:[%s4321_s4 + $0x40] sm:$0xff]  }
 0x350   : > { %v1112_v22 = vpack.c.bf16 %v1110_v20, %v1109_v21  ;;  %v3516_v16 = vld [vmem:[%s4321_s4 + $0x48] sm:$0xff]   ;;  %v3517_v20 = vld [vmem:[%s4321_s4 + $0x50] sm:$0xff]   ;;  %v3518_v21 = vld [vmem:[%s4321_s4 + $0x58] sm:$0xff]  }
 0x352   : > { %3228 = vmatmul.mubr.msk.bf16.vlgmr.msra.gmra.mrb[8].mxu1 %vm1137_vm6, %v1112_v22 }
 0x353   : > { %3265 = vmatpush3.bf16.msra.mxu1 %v3501_v38  ;;  %3276 = vmatprep.mubr.msk.bf16.mxu1 %vm3677_vm12, %v3674_v15 }
 0x354   : > { %3266 = vmatprep.subr.bf16.mxu1 %v3674_v15 }
 0x425   : > { %v3229_v25 = vpop.f32.mrb[8].mxu1 }
 0x426   : > { %v1178_v26 = vpop.f32.mrb[9].mxu1  ;;  %v1195_v28 = vmax.f32 %v3229_v25, 0.0 }
 0x427   : > { %v3230_v27 = vpop.f32.mrb[10].mxu1  ;;  %v1193_v32 = vmax.f32 %v1178_v26, 0.0 }
 0x428   : > { %v1196_v30 = vmax.f32 %v3230_v27, 0.0  ;;  %v1181_v31 = vpop.f32.mrb[11].mxu1 }
 0x429   : > { %v1194_v33 = vmax.f32 %v1181_v31, 0.0 }
 0x42a   : > { %v3384_v34 = vpack.c.bf16 %v1196_v30, %v1195_v28 }
 0x42b   : > { %v3380_v35 = vpack.c.bf16 %v1194_v33, %v1193_v32 }
 0x42d   : > { %3381 = vmatprep.subr.bf16.mxu0 %v3380_v35 }
 0x42e   : > { %3383 = vmatpush3.bf16.msra.mxu0 %v3380_v35 }
 0x42f   : > { %3385 = vmatprep.subr.bf16.mxu0 %v3384_v34 }
 0x432   : > { %3387 = vmatpush3.bf16.msra.mxu0 %v3384_v34 }
 0x433   : > { %3389 = vmatprep.subr.bf16.mxu0 %v3380_v35 }
 0x435   : > { %3240 = vmatmul.mubr.msk.f32.vlgmr.msra.gmra.mrb[20].mxu0 %vm859_vm11, %v2890_v12 }
 0x436   : > { %3391 = vmatpush3.bf16.msra.mxu0 %v3380_v35  ;;  %3250 = vmatprep.mubr.msk.f32.mxu0 %vm859_vm11, %v3808_v17 }
 0x437   : > { %3393 = vmatprep.subr.bf16.mxu0 %v3384_v34 }
 0x43a   : > { %3395 = vmatpush3.bf16.msra.mxu0 %v3384_v34 }
 0x43b   : > { %3397 = vmatprep.subr.bf16.mxu0 %v3380_v35 }
 0x43d   : > { %3251 = vmatmul.mubr.msk.f32.vlgmr.msra.gmra.mrb[22].mxu0 %vm859_vm11, %v3844_v45  ;;  %v3502_v45 = vld [vmem:[%s4320_s3 + $0x8] sm:$0xff]  }
 0x43e   : > { %3399 = vmatpush3.bf16.msra.mxu0 %v3380_v35  ;;  %3261 = vmatprep.mubr.msk.f32.mxu0 %vm859_vm11, %v3945_v36 }
 0x43f   : > { %3401 = vmatprep.subr.bf16.mxu0 %v3384_v34  ;;  %3267 = vmatpush3.bf16.msra.mxu1 %v3502_v45 }
 0x440   : > { %3268 = vmatprep.subr.bf16.mxu1 %v3674_v15 }
 0x442   : > { %3403 = vmatpush3.bf16.msra.mxu0 %v3384_v34 }
 0x443   : > { %3301 = vmatprep.subr.mxu0 %v3674_v15  ;;  %3269 = vmatpush3.bf16.msra.mxu1 %v3503_v13  ;;  %v3521_v13 = vld [vmem:[%s4322_s5 + $0x4] ss:$8 sps:$4 sm:$0xff]  }
 0x444   : > { %3270 = vmatprep.subr.bf16.mxu1 %v3674_v15 }
 0x445   : > { %3262 = vmatmul.mubr.msk.f32.vlgmr.msra.gmra.mrb[24].mxu0 %vm859_vm11, %v2896_v29 }
 0x446   : > { %3303 = vmatprep.mubr.msk.f32.mxu0 %vm3677_vm12, %v3674_v15 }
 0x447   : > { %3271 = vmatpush3.bf16.msra.mxu1 %v3504_v48  ;;  %v3524_v48 = vld [vmem:[%s4322_s5 + $0x14] ss:$8 sps:$4 sm:$0xff]  }
 0x448   : > { %3272 = vmatprep.subr.bf16.mxu1 %v3674_v15 }
 0x44b   : > { %3273 = vmatpush3.bf16.msra.mxu1 %v3505_v40  ;;  %v3533_v40 = vld [vmem:[%s4322_s5 + $0x44] ss:$8 sps:$4 sm:$0xff]  }
 0x44c   : > { %3274 = vmatprep.subr.bf16.mxu1 %v3674_v15 }
 0x44f   : > { %3275 = vmatpush3.bf16.msra.mxu1 %v3506_v41  ;;  %v3531_v41 = vld [vmem:[%s4322_s5 + $0x40] ss:$8 sps:$4 sm:$0xff]  }
 0x450   : > { %3404 = vmatprep.subr.bf16.mxu1 %v3679_v58 }
 0x508   : > { %v3241_v37 = vpop.f32.mrb[20].mxu0 }
 0x509   : > { %v1277_v39 = vpop.f32.mrb[21].mxu0 }
 0x510   : > { %v3252_v42 = vpop.f32.mrb[22].mxu0 }
 0x511   : > { %v1356_v18 = vpop.f32.mrb[23].mxu0 }
 0x512   : > { %v3484_v19 = vpack.i.bf16 %v3252_v42, %v1356_v18  ;;  %v3536_v42 = vld [vmem:[%s4322_s5 + $0x54] ss:$8 sps:$4 sm:$0xff]   ;;  %v3534_v18 = vld [vmem:[%s4322_s5 + $0x50] ss:$8 sps:$4 sm:$0xff]  }
 0x514   : > { %3485 = vrot.lane.b32.xlu0 %v3484_v19, %s3676_s28  ;;  %v3539_v19 = vld [vmem:[%s4322_s5 + $0x64] ss:$8 sps:$4 sm:$0xff]  }
 0x518   : > { %v3263_v43 = vpop.f32.mrb[24].mxu0 }
 0x519   : > { %v1443_v24 = vpop.f32.mrb[25].mxu0 }
 0x51a   : > { %v3489_v44 = vpack.i.bf16 %v3263_v43, %v1443_v24  ;;  %v3537_v43 = vld [vmem:[%s4322_s5 + $0x60] ss:$8 sps:$4 sm:$0xff]   ;;  %v3542_v24 = vld [vmem:[%s4322_s5 + $0x74] ss:$8 sps:$4 sm:$0xff]  }
 0x51c   : > { %3490 = vrot.lane.b32.xlu1 %v3489_v44, %s3678_s11  ;;  %v3540_v44 = vld [vmem:[%s4322_s5 + $0x70] ss:$8 sps:$4 sm:$0xff]  }
 0x586   : > { %v3486_v46 = vpop.permute.xlu0 %3485 }
 0x587   : > { %v3488_v47 = vunpack.i.h.bf16 %v3486_v46  ;;  %v3487_v49 = vunpack.i.l.bf16 %v3486_v46  ;;  %v3545_v46 = vld [vmem:[%s4322_s5 + $0x84] ss:$8 sps:$4 sm:$0xff]  }
 0x589   : > { %v1469_v53 = vsel %vm859_vm11, %v3241_v37, %v3488_v47  ;;  %v1468_v54 = vsel %vm859_vm11, %v1277_v39, %v3487_v49  ;;  %vm1931_vm11 = vcmask 64512   ;;  %v3525_v37 = vld [vmem:[%s4322_s5 + $0x20] ss:$8 sps:$4 sm:$0xff]   ;;  %v3528_v39 = vld [vmem:[%s4322_s5 + $0x30] ss:$8 sps:$4 sm:$0xff]  }
 0x58a   : > { %v3543_v47 = vld [vmem:[%s4322_s5 + $0x80] ss:$8 sps:$4 sm:$0xff]   ;;  %v3548_v49 = vld [vmem:[%s4322_s5 + $0x94] ss:$8 sps:$4 sm:$0xff]  }
 0x58e   : > { %v3491_v50 = vpop.permute.xlu1 %3490 }
 0x58f   : > { %v3493_v51 = vunpack.i.h.bf16 %v3491_v50  ;;  %v3492_v52 = vunpack.i.l.bf16 %v3491_v50  ;;  %v3546_v50 = vld [vmem:[%s4322_s5 + $0x90] ss:$8 sps:$4 sm:$0xff]  }
 0x591   : > { %v1471_v55 = vsel %vm507_vm5, %v1469_v53, %v3493_v51  ;;  %v1470_v56 = vsel %vm507_vm5, %v1468_v54, %v3492_v52  ;;  %v3551_v51 = vld [vmem:[%s4322_s5 + $0xa4] ss:$8 sps:$4 sm:$0xff]   ;;  %v3549_v52 = vld [vmem:[%s4322_s5 + $0xa0] ss:$8 sps:$4 sm:$0xff]   ;;  %v3554_v53 = vld [vmem:[%s4322_s5 + $0xb4] ss:$8 sps:$4 sm:$0xff]  }
 0x592   : > { %v1472_v57 = vpack.c.bf16 %v1471_v55, %v1470_v56  ;;  %v3552_v54 = vld [vmem:[%s4322_s5 + $0xb0] ss:$8 sps:$4 sm:$0xff]   ;;  %v3557_v55 = vld [vmem:[%s4322_s5 + $0xc4] ss:$8 sps:$4 sm:$0xff]   ;;  %v3555_v56 = vld [vmem:[%s4322_s5 + $0xc0] ss:$8 sps:$4 sm:$0xff]  }
 0x594   : > { %3277 = vmatmul.mubr.msk.bf16.vlgmr.msra.gmra.mrb[12].mxu1 %vm1521_vm13, %v1472_v57  ;;  %v3560_v57 = vld [vmem:[%s4322_s5 + $0xd4] ss:$8 sps:$4 sm:$0xff]  }
 0x595   : > { %3284 = vmatprep.mubr.msk.f32.mxu1 %vm3677_vm12, %v3674_v15 }
 0x667   : > { %v1559_v59 = vpop.f32.mrb[12].mxu1 }
 0x668   : > { %v3278_v60 = vpop.f32.mrb[13].mxu1  ;;  %v1566_v62 = vmax.f32 %v1559_v59, 0.0  ;;  %v3563_v59 = vld [vmem:[%s4322_s5 + $0xe4] ss:$8 sps:$4 sm:$0xff]  }
 0x669   : > { %v1562_v61 = vpop.f32.mrb[14].mxu1  ;;  %v3561_v60 = vld [vmem:[%s4322_s5 + $0xe0] ss:$8 sps:$4 sm:$0xff]  }
 0x66a   : > { %v1567_v63 = vmax.f32 %v1562_v61, 0.0  ;;  %v3279_v0 = vpop.f32.mrb[15].mxu1  ;;  %v3564_v61 = vld [vmem:[%s4322_s5 + $0xf0] ss:$8 sps:$4 sm:$0xff]  }
 0x66c   : > { %v3405_v1 = vpack.c.bf16 %v1567_v63, %v1566_v62  ;;  %v3566_v62 = vld [vmem:[%s4322_s5 + $0xf4] ss:$8 sps:$4 sm:$0xff]   ;;  %v3569_v63 = vld [vmem:[%s4322_s5 + $0x104] ss:$8 sps:$4 sm:$0xff]  }
 0x66e   : > { %3406 = vmatpush3.bf16.msra.mxu1 %v3405_v1 }
 0x66f   : > { %3407 = vmatprep.subr.bf16.mxu1 %v3679_v58 }
 0x671   : > { %3285 = vmatmul.mubr.msk.f32.vlgmr.msra.gmra.mrb[16].mxu1 %vm1102_vm4, %v3932_v23 }
 0x672   : > { %3409 = vmatpush3.bf16.msra.mxu1 %v3405_v1  ;;  %3291 = vmatprep.mubr.msk.f32.mxu1 %vm3677_vm12, %v3674_v15 }
 0x673   : > { %3410 = vmatprep.subr.bf16.mxu1 %v3679_v58  ;;  %v3558_v58 = vld [vmem:[%s4322_s5 + $0xd0] ss:$8 sps:$4 sm:$0xff]  }
 0x675   : > { %3292 = vmatmul.mubr.msk.f32.vlgmr.msra.gmra.mrb[18].mxu1 %vm1102_vm4, %v3808_v17 }
 0x676   : > { %3412 = vmatpush3.bf16.msra.mxu1 %v3405_v1  ;;  %3298 = vmatprep.mubr.msk.f32.mxu1 %vm3677_vm12, %v3674_v15 }
 0x677   : > { %1890 = vmatprep.subr.bf16.mxu1 %v3680_v3 }
 0x679   : > { %3299 = vmatmul.mubr.msk.f32.vlgmr.msra.gmra.mrb[20].mxu1 %vm1102_vm4, %v3945_v36 }
 0x67a   : > { %1891 = vmatpush1.bf16.msra.mxu1 %v3507_v2 }
 0x67b   : > { %1892 = vmatprep.subr.bf16.mxu1 %v3680_v3 }
 0x67e   : > { %1893 = vmatpush1.bf16.msra.mxu1 %v3508_v4 }
 0x67f   : > { %1894 = vmatprep.subr.bf16.mxu1 %v3680_v3 }
 0x682   : > { %1895 = vmatpush1.bf16.msra.mxu1 %v3509_v5  ;;  %v3567_v5 = vld [vmem:[%s4322_s5 + $0x100] ss:$8 sps:$4 sm:$0xff]  }
 0x683   : > { %1896 = vmatprep.subr.bf16.mxu1 %v3680_v3 }
 0x686   : > { %1897 = vmatpush1.bf16.msra.mxu1 %v3510_v6 }
 0x687   : > { %1898 = vmatprep.subr.bf16.mxu1 %v3680_v3 }
 0x68a   : > { %1899 = vmatpush1.bf16.msra.mxu1 %v3511_v7 }
 0x68b   : > { %1900 = vmatprep.subr.bf16.mxu1 %v3680_v3 }
 0x68e   : > { %1901 = vmatpush1.bf16.msra.mxu1 %v3512_v8  ;;  %v3572_v8 = vld [vmem:[%s4322_s5 + $0x114] ss:$8 sps:$4 sm:$0xff]  }
 0x68f   : > { %1902 = vmatprep.subr.bf16.mxu1 %v3680_v3 }
 0x692   : > { %1903 = vmatpush1.bf16.msra.mxu1 %v3513_v9 }
 0x693   : > { %1904 = vmatprep.subr.bf16.mxu1 %v3680_v3 }
 0x696   : > { %1905 = vmatpush1.bf16.msra.mxu1 %v3514_v11  ;;  %v3570_v11 = vld [vmem:[%s4322_s5 + $0x110] ss:$8 sps:$4 sm:$0xff]  }
 0x697   : > { %1906 = vmatprep.subr.bf16.mxu1 %v3680_v3 }
 0x69a   : > { %1907 = vmatpush1.bf16.msra.mxu1 %v3515_v14 }
 0x69b   : > { %1908 = vmatprep.subr.bf16.mxu1 %v3680_v3 }
 0x69e   : > { %1909 = vmatpush1.bf16.msra.mxu1 %v3516_v16  ;;  %v3575_v16 = vld [vmem:[%s4322_s5 + $0x124] ss:$8 sps:$4 sm:$0xff]  }
 0x69f   : > { %1910 = vmatprep.subr.bf16.mxu1 %v3680_v3 }
 0x6a2   : > { %1911 = vmatpush1.bf16.msra.mxu1 %v3517_v20  ;;  %v3573_v20 = vld [vmem:[%s4322_s5 + $0x120] ss:$8 sps:$4 sm:$0xff]  }
 0x6a3   : > { %1912 = vmatprep.subr.bf16.mxu1 %v3680_v3 }
 0x6a6   : > { %1913 = vmatpush1.bf16.msra.mxu1 %v3518_v21  ;;  %v3578_v21 = vld [vmem:[%s4322_s5 + $0x134] ss:$8 sps:$4 sm:$0xff]  }
 0x744   : > { %v1636_v22 = vpop.f32.mrb[16].mxu1 }
 0x745   : > { %v3286_v25 = vpop.f32.mrb[17].mxu1 }
 0x746   : > { %v3579_v25 = vld [vmem:[%s4322_s5 + $0x140] ss:$8 sps:$4 sm:$0xff]  }
 0x748   : > { %v1708_v26 = vpop.f32.mrb[18].mxu1 }
 0x749   : > { %1785 = vrot.lane.b32.xlu0 %v1708_v26, %s3678_s11  ;;  %v3293_v27 = vpop.f32.mrb[19].mxu1  ;;  %v3584_v26 = vld [vmem:[%s4322_s5 + $0x154] ss:$8 sps:$4 sm:$0xff]   ;;  %s350_s11 = sand.u32 1, %s3663_s14  }
 0x74a   : > { %v3582_v27 = vld [vmem:[%s4322_s5 + $0x150] ss:$8 sps:$4 sm:$0xff]   ;;  %s351_s27 = scalar_lea.vmem [#allocation2], %s350_s11  ;;  %s2759_s18 = scalar_lea.sflag [#allocation3], %s350_s11 }
 0x74b   : > { %s2771_s29 = sshll.u32 %s351_s27, 4  ;;  %s4277_s29 = int_to_ptr.vmem [resolvable:$true] %s2771_s29 }
 0x74c   : > { %v1780_v28 = vpop.f32.mrb[20].mxu1  ;;  %s3609_s17 = scalar_lea.vmem %s4277_s29, 16  ;;  %p3616_p0 = scmp.lt.s32.totalorder %s4277_s29, %s3614_s21 }
 0x74d   : > { %v1790_v30 = vpack.c.bf16 %v1780_v28, %v1780_v28  ;;  %v3300_v31 = vpop.f32.mrb[21].mxu1  ;;  %v3587_v28 = vld [vmem:[%s4322_s5 + $0x164] ss:$8 sps:$4 sm:$0xff]   ;;  %p3610_p11 = scmp.ne.s32.totalorder %s4277_s29, %s3609_s17  ;;  %p3617_p1 = scmp.lt.s32.totalorder %s3615_s25, %s3609_s17 }
 0x74e   : > { %v3590_v31 = vld [vmem:[%s4322_s5 + $0x174] ss:$8 sps:$4 sm:$0xff]  }
 0x74f   : > { %2921 = vmatprep.mubr.msk.bf16.mxu1 %vm507_vm5, %v1790_v30  ;;  %v3585_v30 = vld [vmem:[%s4322_s5 + $0x160] ss:$8 sps:$4 sm:$0xff]   ;;  %p3611_p12 = pnand %p3610_p11, %p3775_p5  ;;  %p3618_p2 = por %p3617_p1, %p3616_p0 }
 0x751   : > { %p3612_p13 = pneg %p3611_p12 }
 0x753   : > { %p3619_p3 = pnand %p3618_p2, %p3612_p13 }
 0x7bb   : > { %v1786_v32 = vpop.permute.xlu0 %1785 }
 0x7bc   : > { %v1788_v33 = vsel %vm507_vm5, %v1636_v22, %v1786_v32  ;;  %v3581_v22 = vld [vmem:[%s4322_s5 + $0x144] ss:$8 sps:$4 sm:$0xff]   ;;  %v3588_v32 = vld [vmem:[%s4322_s5 + $0x170] ss:$8 sps:$4 sm:$0xff]  }
 0x7bd   : > { %v1789_v34 = vpack.c.bf16 %v1788_v33, %v1788_v33 }
 0x7bf   : > { %1923 = vmatmul.mubr.bf16.vlgmr.msra.gmra.mrb[24].mxu1 %v1789_v34 }
 0x892   : > { %v1924_v35 = vpop.f32.mrb[24].mxu1 }
 0x893   : > { %v1930_v12 = vmax.f32 %v1924_v35, 0.0  ;;  %v1926_v29 = vpop.f32.mrb[25].mxu1 }
 0x894   : > { %v1927_v38 = vpop.f32.mrb[26].mxu1 }
 0x895   : > { %v1928_v45 = vpop.f32.mrb[27].mxu1  ;;  %3302 = vmatpush3.msra.mxu0 %v1930_v12 }
 0x896   : > { %3304 = vmatmul.mubr.msk.f32.vlgmr.msra.gmra.mrb[26].mxu0 %vm1931_vm11, %v3932_v23  ;;  %3306 = vmatprep.subr.mxu0 %v3674_v15  ;;  %v3519_v23 = vld [vmem:[%s4322_s5] ss:$8 sps:$4 sm:$0xff]  }
 0x897   : > { %3307 = vmatpush3.msra.mxu0 %v1930_v12  ;;  %3308 = vmatprep.mubr.msk.f32.mxu0 %vm3677_vm12, %v3674_v15 }
 0x898   : > { %3311 = vmatprep.subr.mxu0 %v3674_v15 }
 0x89a   : > { %3309 = vmatmul.mubr.msk.f32.vlgmr.msra.gmra.mrb[28].mxu0 %vm1931_vm11, %v3808_v17  ;;  %v3522_v17 = vld [vmem:[%s4322_s5 + $0x10] ss:$8 sps:$4 sm:$0xff]  }
 0x89b   : > { %3312 = vmatpush3.msra.mxu0 %v1930_v12  ;;  %3313 = vmatprep.mubr.msk.f32.mxu0 %vm3677_vm12, %v3674_v15  ;;  %v3527_v15 = vld [vmem:[%s4322_s5 + $0x24] ss:$8 sps:$4 sm:$0xff]  }
 0x89c   : > { %2439 = vmatprep.subr.bf16.mxu0 %v3521_v13 }
 0x89e   : > { %3314 = vmatmul.mubr.msk.f32.vlgmr.msra.gmra.mrb[30].mxu0 %vm1931_vm11, %v3945_v36  ;;  %v3530_v36 = vld [vmem:[%s4322_s5 + $0x34] ss:$8 sps:$4 sm:$0xff]  }
 0x89f   : > { %2440 = vmatpush1.bf16.msra.mxu0 %v3519_v23 }
 0x8a0   : > { %2441 = vmatprep.subr.bf16.mxu0 %v3524_v48 }
 0x8a3   : > { %2442 = vmatpush1.bf16.msra.mxu0 %v3522_v17 }
 0x8a4   : > { %2443 = vmatprep.subr.bf16.mxu0 %v3527_v15 }
 0x8a7   : > { %2444 = vmatpush1.bf16.msra.mxu0 %v3525_v37 }
 0x8a8   : > { %2445 = vmatprep.subr.bf16.mxu0 %v3530_v36 }
 0x8ab   : > { %2446 = vmatpush1.bf16.msra.mxu0 %v3528_v39 }
 0x8ac   : > { %2447 = vmatprep.subr.bf16.mxu0 %v3533_v40 }
 0x8af   : > { %2448 = vmatpush1.bf16.msra.mxu0 %v3531_v41 }
 0x8b0   : > { %2449 = vmatprep.subr.bf16.mxu0 %v3536_v42 }
 0x8b3   : > { %2450 = vmatpush1.bf16.msra.mxu0 %v3534_v18 }
 0x8b4   : > { %2451 = vmatprep.subr.bf16.mxu0 %v3539_v19 }
 0x8b7   : > { %2452 = vmatpush1.bf16.msra.mxu0 %v3537_v43 }
 0x8b8   : > { %2453 = vmatprep.subr.bf16.mxu0 %v3542_v24 }
 0x8bb   : > { %2454 = vmatpush1.bf16.msra.mxu0 %v3540_v44 }
 0x8bc   : > { %2455 = vmatprep.subr.bf16.mxu0 %v3545_v46 }
 0x8bf   : > { %2456 = vmatpush1.bf16.msra.mxu0 %v3543_v47  ;;  %v3591_v47 = vld [vmem:[%s4325_s8 + $0x40] sm:$0xff]  }
 0x8c0   : > { %2457 = vmatprep.subr.bf16.mxu0 %v3548_v49  ;;  %v3592_v49 = vld [vmem:[%s4325_s8] sm:$0xff]   ;;  %3095 = vmatprep.subr.bf16.mxu1 %v3591_v47 }
 0x8c1   : > { %3096 = vmatpush3.bf16.msra.mxu1 %v3592_v49 }
 0x8c3   : > { %2458 = vmatpush1.bf16.msra.mxu0 %v3546_v50  ;;  %v3593_v50 = vld [vmem:[%s4325_s8 + $0x48] sm:$0xff]  }
 0x8c4   : > { %2459 = vmatprep.subr.bf16.mxu0 %v3551_v51  ;;  %v3594_v51 = vld [vmem:[%s4325_s8 + $0x8] sm:$0xff]   ;;  %3097 = vmatprep.subr.bf16.mxu1 %v3593_v50 }
 0x8c5   : > { %3098 = vmatpush3.bf16.msra.mxu1 %v3594_v51 }
 0x8c7   : > { %2460 = vmatpush1.bf16.msra.mxu0 %v3549_v52 }
 0x8c8   : > { %2461 = vmatprep.subr.bf16.mxu0 %v3554_v53 }
 0x8cb   : > { %2462 = vmatpush1.bf16.msra.mxu0 %v3552_v54 }
 0x8cc   : > { %2463 = vmatprep.subr.bf16.mxu0 %v3557_v55 }
 0x8cf   : > { %2464 = vmatpush1.bf16.msra.mxu0 %v3555_v56 }
 0x8d0   : > { %2465 = vmatprep.subr.bf16.mxu0 %v3560_v57 }
 0x8d3   : > { %2466 = vmatpush1.bf16.msra.mxu0 %v3558_v58 }
 0x8d4   : > { %2467 = vmatprep.subr.bf16.mxu0 %v3563_v59  ;;  %v3595_v59 = vld [vmem:[%s4325_s8 + $0x50] sm:$0xff]  }
 0x8d5   : > { %3099 = vmatprep.subr.bf16.mxu1 %v3595_v59 }
 0x8d7   : > { %2468 = vmatpush1.bf16.msra.mxu0 %v3561_v60  ;;  %v3596_v60 = vld [vmem:[%s4325_s8 + $0x10] sm:$0xff]  }
 0x8d8   : > { %2469 = vmatprep.subr.bf16.mxu0 %v3566_v62  ;;  %3100 = vmatpush3.bf16.msra.mxu1 %v3596_v60  ;;  %v3598_v62 = vld [vmem:[%s4325_s8 + $0x18] sm:$0xff]  }
 0x8db   : > { %2470 = vmatpush1.bf16.msra.mxu0 %v3564_v61  ;;  %v3597_v61 = vld [vmem:[%s4325_s8 + $0x58] sm:$0xff]  }
 0x8dc   : > { %2480 = vmatprep.subr.bf16.mxu0 %v3569_v63  ;;  %3101 = vmatprep.subr.bf16.mxu1 %v3597_v61  ;;  %v3599_v63 = vld [vmem:[%s4325_s8 + $0x60] sm:$0xff]  }
 0x8dd   : > { %3102 = vmatpush3.bf16.msra.mxu1 %v3598_v62 }
 0x8de   : > { %3103 = vmatprep.subr.bf16.mxu1 %v3599_v63 }
 0x969   : > { %v2000_v0 = vpop.f32.mrb[26].mxu0 }
 0x96a   : > { %v3305_v1 = vpop.f32.mrb[27].mxu0  ;;  %v2148_v7 = vpack.c.bf16 %v2000_v0, %v2000_v0  ;;  %v3600_v0 = vld [vmem:[%s4325_s8 + $0x20] sm:$0xff]  }
 0x96b   : > { %3104 = vmatpush3.bf16.msra.mxu1 %v3600_v0  ;;  %v3601_v1 = vld [vmem:[%s4325_s8 + $0x68] sm:$0xff]  }
 0x96c   : > { %3105 = vmatprep.subr.bf16.mxu1 %v3601_v1 }
 0x96d   : > { %v2072_v2 = vpop.f32.mrb[28].mxu0 }
 0x96e   : > { %v2149_v4 = vpack.c.bf16 %v2072_v2, %v2072_v2  ;;  %v3310_v6 = vpop.f32.mrb[29].mxu0  ;;  %v3602_v2 = vld [vmem:[%s4325_s8 + $0x28] sm:$0xff]  }
 0x96f   : > { %3106 = vmatpush3.bf16.msra.mxu1 %v3602_v2  ;;  %v3605_v6 = vld [vmem:[%s4325_s8 + $0x78] sm:$0xff]  }
 0x970   : > { %2471 = vmatprep.mubr.bf16.mxu0 %v2149_v4  ;;  %v3603_v4 = vld [vmem:[%s4325_s8 + $0x70] sm:$0xff]  }
 0x971   : > { %2472 = vmatmul.mubr.bf16.vlgmr.msra.gmra.mrb[32].mxu0 %v2148_v7  ;;  %v2144_v9 = vpop.f32.mrb[30].mxu0  ;;  %3107 = vmatprep.subr.bf16.mxu1 %v3603_v4  ;;  %v3606_v7 = vld [vmem:[%s4325_s8 + $0x38] sm:$0xff]  }
 0x972   : > { %2481 = vmatpush1.bf16.msra.mxu0 %v3567_v5  ;;  %2512 = vmatprep.mubr.bf16.mxu0 %v3680_v3  ;;  %v3315_v14 = vpop.f32.mrb[31].mxu0  ;;  %v3576_v3 = vld [vmem:[%s4322_s5 + $0x130] ss:$8 sps:$4 sm:$0xff]   ;;  %v2150_v33 = vpack.c.bf16 %v2144_v9, %v2144_v9 }
 0x973   : > { %2482 = vmatprep.subr.bf16.mxu0 %v3572_v8  ;;  %v3604_v5 = vld [vmem:[%s4325_s8 + $0x30] sm:$0xff]   ;;  %v2561_v14 = vsub.s32 0, %v3794_v10 }
 0x974   : > { %3108 = vmatpush3.bf16.msra.mxu1 %v3604_v5 }
 0x975   : > { %3109 = vmatprep.subr.bf16.mxu1 %v3605_v6 }
 0x976   : > { %2483 = vmatpush1.bf16.msra.mxu0 %v3570_v11 }
 0x977   : > { %2484 = vmatprep.subr.bf16.mxu0 %v3575_v16  ;;  %v2565_v16 = vsub.s32 1, %v3794_v10 }
 0x978   : > { %3110 = vmatpush3.bf16.msra.mxu1 %v3606_v7 }
 0x97a   : > { %2485 = vmatpush1.bf16.msra.mxu0 %v3573_v20  ;;  %v2557_v20 = vld [vmem:[%s4323_s6] sm:$0x3] }
 0x97b   : > { %2486 = vmatprep.subr.bf16.mxu0 %v3578_v21  ;;  %v2571_v21 = vld [vmem:[%s4324_s7] sm:$0x3] }
 0x97e   : > { %2487 = vmatpush1.bf16.msra.mxu0 %v3576_v3  ;;  %v2562_v3 = vrot.slane %v2557_v20, %v2561_v14 }
 0x97f   : > { %2488 = vmatprep.subr.bf16.mxu0 %v3581_v22  ;;  %v2566_v22 = vrot.slane %v2557_v20, %v2565_v16 }
 0x982   : > { %2489 = vmatpush1.bf16.msra.mxu0 %v3579_v25 }
 0x983   : > { %2490 = vmatprep.subr.bf16.mxu0 %v3584_v26 }
 0x986   : > { %2491 = vmatpush1.bf16.msra.mxu0 %v3582_v27 }
 0x987   : > { %2492 = vmatprep.subr.bf16.mxu0 %v3587_v28  ;;  %v2576_v28 = vrot.slane %v2571_v21, %v2561_v14 }
 0x98a   : > { %2493 = vmatpush1.bf16.msra.mxu0 %v3585_v30  ;;  %v2580_v30 = vrot.slane %v2571_v21, %v2565_v16 }
 0x98b   : > { %2494 = vmatprep.subr.bf16.mxu0 %v3590_v31 }
 0x98e   : > { %2495 = vmatpush1.bf16.msra.mxu0 %v3588_v32 }
 0x991   : > { %2513 = vmatmul.mubr.bf16.vlgmr.msra.gmra.mrb[32].mxu0 %v2150_v33 }
 0xa64   : > { %v2514_v34 = vpop.f32.mrb[32].mxu0 }
 0xa65   : > { %v2521_v35 = vmax.f32 %v2514_v34, 0.0  ;;  %v2516_v12 = vpop.f32.mrb[33].mxu0 }
 0xa66   : > { %v2522_v29 = vmax.f32 %v2516_v12, 0.0  ;;  %v2518_v38 = vpop.f32.mrb[34].mxu0 }
 0xa67   : > { %v2523_v45 = vsel %vm401_vm1, %v2521_v35, 0.0  ;;  %v2519_v13 = vpop.f32.mrb[35].mxu0 }
 0xa68   : > { %v2524_v23 = vrot.slane %v2523_v45, 4  ;;  %v2530_v48 = vsel %vm401_vm1, %v2522_v29, 0.0  ;;  %v2619_v29 = vld [vmem:[%s4326_s9] sm:$0x1]  ;;  %vm2756_vm1 = vcmask 73728  }
 0xa69   : > { %v2531_v17 = vrot.slane %v2530_v48, 4 }
 0xa6a   : > { %v2525_v15 = vadd.f32 %v2524_v23, %v2523_v45 }
 0xa6b   : > { %v2532_v37 = vadd.f32 %v2531_v17, %v2530_v48 }
 0xa6c   : > { %v2526_v36 = vrot.slane %v2525_v15, 2 }
 0xa6d   : > { %v2533_v39 = vrot.slane %v2532_v37, 2 }
 0xa6e   : > { %v2527_v40 = vadd.f32 %v2526_v36, %v2525_v15 }
 0xa6f   : > { %v2534_v41 = vadd.f32 %v2533_v39, %v2532_v37 }
 0xa70   : > { %v2528_v42 = vrot.slane %v2527_v40, 1 }
 0xa71   : > { %v2535_v18 = vrot.slane %v2534_v41, 1 }
 0xa72   : > { %v2529_v19 = vadd.f32 %v2528_v42, %v2527_v40 }
 0xa73   : > { %v2536_v43 = vadd.f32 %v2535_v18, %v2534_v41 }
 0xa74   : > { %v2538_v24 = vmul.f32 0.25, %v2529_v19 }
 0xa75   : > { %v2539_v44 = vmul.f32 0.25, %v2536_v43 }
 0xa77   : > { %v2540_v46 = vadd.f32 %v2539_v44, %v2538_v24 }
 0xa79   : > { %2541 = vadd.xlane.f32.xlu1 %v2540_v46 }
 0xb06   : > { %v2542_v52 = vpop.xlane.xlu1 %2541 }
 0xb07   : > { %v2544_v53 = vmul.f32 0.00390625, %v2542_v52 }
 0xb09   : > { %v2545_v54 = vsub.f32 %v2538_v24, %v2544_v53  ;;  %v2546_v55 = vsub.f32 %v2539_v44, %v2544_v53 }
 0xb0b   : > { %v2547_v56 = vmul.f32 %v2545_v54, %v2545_v54  ;;  %v2548_v57 = vmul.f32 %v2546_v55, %v2546_v55 }
 0xb0d   : > { %v2549_v58 = vadd.f32 %v2548_v57, %v2547_v56 }
 0xb0f   : > { %2550 = vadd.xlane.f32.xlu0 %v2549_v58 }
 0xb9c   : > { %v2551_v8 = vpop.xlane.xlu0 %2550 }
 0xb9d   : > { %v2552_v9 = vmul.f32 0.00390625, %v2551_v8 }
 0xb9f   : > { %v2553_v11 = vadd.f32 1e-05, %v2552_v9 }
 0xba1   : > { %3607 = vrsqrt.f32 %v2553_v11 }
 0xbab   : > { %v3608_v25 = vpop.eup %3607 }
 0xbac   : > { %v2555_v26 = vmul.f32 %v3608_v25, %v2545_v54  ;;  %v2556_v27 = vmul.f32 %v3608_v25, %v2546_v55 }
 0xbae   : > { %v2570_v31 = vmul.f32 %v2566_v22, %v2556_v27  ;;  %v2569_v32 = vmul.f32 %v2562_v3, %v2555_v26 }
 0xbb0   : > { %v2584_v10 = vadd.f32 %v2580_v30, %v2570_v31  ;;  %v2583_v33 = vadd.f32 %v2576_v28, %v2569_v32 }
 0xbb2   : > { %v2586_v34 = vpack.c.bf16 %v2584_v10, %v2584_v10  ;;  %v2585_v35 = vpack.c.bf16 %v2583_v33, %v2583_v33 }
 0xbb4   : > { %2748 = vmatprep.mubr.bf16.mxu1 %v2586_v34 }
 0xbb5   : > { %2749 = vmatmul.mubr.bf16.vlgmr.msra.gmra.mrb[28].mxu1 %v2585_v35 }
 0xc88   : > { %v3111_v12 = vpop.f32.mrb[28].mxu1 }
 0xc89   : > { %v3112_v38 = vpop.f32.mrb[29].mxu1 }
 0xc8a   : > { %v3113_v45 = vadd.f32 %v3112_v38, %v3111_v12  ;;  %v3114_v13 = vpop.f32.mrb[30].mxu1 }
 0xc8b   : > { %v3115_v23 = vpop.f32.mrb[31].mxu1 }
 0xc8c   : > { %v2751_v48 = vadd.f32 %v3113_v45, %v2619_v29 }
 0xc8e   : > { %2757 = vst.msk [vmem:[%s351_s27] sm:$0x1] %vm2756_vm1, %v2751_v48 }
 0xc8f   : > { %3622 = shalt.err (!%p3619_p3)
}
 0xc90   : > { %s3623_s11 = scalar_lea.hbm %s4275_s12, 16  ;;  %s3627_s30 = scalar_lea.hbm %s4327_s10, 32 }
 0xc91   : > { %p3624_p4 = scmp.ne.s32.totalorder %s4275_s12, %s3623_s11  ;;  %p3628_p9 = scmp.lt.u32.totalorder %s4275_s12, %s4327_s10 }
 0xc92   : > { %p3629_p10 = scmp.lt.u32.totalorder %s3627_s30, %s3623_s11  ;;  %p3631_p12 = scmp.lt.u32.totalorder %s3623_s11, %s4275_s12 }
 0xc93   : > { %p3625_p7 = pnand %p3624_p4, %p3775_p5 }
 0xc94   : > { %p3630_p11 = por %p3629_p10, %p3628_p9 }
 0xc95   : > { %p3626_p8 = pneg %p3625_p7 }
 0xc96   : > { %p3632_p13 = por %p3631_p12, %p3630_p11 }
 0xc98   : > { %p3633_p0 = pnand %p3632_p13, %p3626_p8 }
 0xc9a   : > { %3636 = shalt.err (!%p3633_p0)
}
 0xc9b   : > { %3417 = dma.vmem_to_hbm [thread:$0]  (%p3775_p5), %s4277_s29, 16, %s4275_s12, %s2759_s18  }
 0xc9c PF: > { %p3423_p1 = scmp.ge.s32.totalorder %s3671_s16, 2  ;;  %s2783_s17 = sand.u32 1, %s3659_s13  }
 0xc9d   : > { %s2784_s21 = scalar_lea.sflag [#allocation3], %s2783_s17 }
 0xc9e   : > { %p3420_p2 = pnand %p3423_p1, %p3779_p6 }
 0xca0   : > { %3654 = dma.done.wait (!%p3420_p2), %s2784_s21, 16  }
 0xca1   : > { %3656 = vsyncadd (!%p3420_p2), %s2784_s21, 4294967280  ;;  %p20_p3 = scmp.ge.s32.totalorder %s3762_s19, 4   ;;  %s4330_s13 = smov %s3663_s14 }
 0xca2   : > { %s4331_s14 = smov %s3667_s15  ;;  %s4332_s15 = smov %s3773_s22 }
 0xca3   : > { %s4333_s16 = smov %s3762_s19  ;;  %22 = sbr.rel (!%p20_p3) target bundleno = 3 (0x3), region = 95 }
 0xcaa   :  { %2788 = vsyncpa [#allocation3], 1 }
 0xcab   :  { %2790 = vsyncpa [#allocation3 + $0x1], 1 }

</bundles_post_ra>
